<compile_context>
chip_gen: v5e
topology: v5e:2x2
jax: 0.10.0
libtpu: 0.0.40
codegen_flags: <defaults>
</compile_context>

<pallas_src>
import functools

import jax
import jax.numpy as jnp
from jax import lax
from jax.experimental import pallas as pl
from jax.experimental.pallas import tpu as pltpu

OUT_PAD = 128  # lane-pad the 2-class logits to one full vreg lane width


def fused_gru_kernel(ids_ref, emb_ref, wih_ref, whh_ref, bihf_ref, bhn_ref,
                     wout_ref, bout_ref, out_ref, gi_scratch,
                     *, seq_len, batch, hidden_pad, vocab):
    """Fused: embedding gather -> input projection (all T) -> unrolled GRU
    recurrence -> Linear on the last hidden state.  Single invocation, no grid."""
    T, B, Hp, V = seq_len, batch, hidden_pad, vocab
    TB = T * B

    # ---- Prologue (all off the serial dependency chain) -------------------
    # Embedding gather as a one-hot MXU matmul (vocab is small in this test).
    ids = ids_ref[...]                                           # (TB, 1) int32
    vocab_iota = lax.broadcasted_iota(jnp.int32, (TB, V), 1)     # (TB, V)
    onehot = (ids == vocab_iota).astype(jnp.float32)             # (TB, V)
    x_flat = jnp.dot(onehot, emb_ref[...],
                     preferred_element_type=jnp.float32)         # (TB, E)

    # Input projection for every timestep at once; b_ir+b_hr / b_iz+b_hz were
    # folded into bihf at pack time, so gi already carries both r/z biases.
    gi_scratch[...] = (
        jnp.dot(x_flat, wih_ref[...], preferred_element_type=jnp.float32)
        + bihf_ref[...])                                         # (TB, 3Hp)

    # Hoist loop-invariant loads / broadcasts out of the unrolled recurrence.
    whh = whh_ref[...]                                           # (Hp, 3Hp) bf16
    bhn_b = jnp.broadcast_to(bhn_ref[...], (B, Hp))              # (B, Hp)

    # ---- Peeled step t = 0: h0 == 0, so gh == 0 and no recurrent matmul ----
    gi0 = gi_scratch[0:B, :]
    r0 = jax.nn.sigmoid(gi0[:, 0:Hp])
    z0 = jax.nn.sigmoid(gi0[:, Hp:2 * Hp])
    n0 = jnp.tanh(gi0[:, 2 * Hp:3 * Hp] + r0 * bhn_b)
    h = (1.0 - z0) * n0                                          # (B, Hp)

    # ---- Serial GRU recurrence t = 1 .. T-1, fully unrolled ----------------
    def step(t, h_prev):
        base = pl.multiple_of(t * B, B)
        gi = gi_scratch[pl.ds(base, B), :]                       # (B, 3Hp)
        gh = jnp.dot(h_prev.astype(jnp.bfloat16), whh,
                     preferred_element_type=jnp.float32)         # (B, 3Hp)

        # PyTorch gate order [r, z, n]; every gate slice is a full 128-lane tile.
        r = jax.nn.sigmoid(gi[:, 0:Hp] + gh[:, 0:Hp])
        z = jax.nn.sigmoid(gi[:, Hp:2 * Hp] + gh[:, Hp:2 * Hp])
        # b_hn stays inside the r * (...) term -> matches PyTorch exactly.
        n = jnp.tanh(gi[:, 2 * Hp:3 * Hp] + r * (gh[:, 2 * Hp:3 * Hp] + bhn_b))
        return (1.0 - z) * n + z * h_prev

    h_last = lax.fori_loop(1, T, step, h, unroll=True)

    # ---- Epilogue: last hidden state -> Linear(nhid, 2), lane-padded dense store.
    out_ref[...] = (jnp.dot(h_last, wout_ref[...],
                            preferred_element_type=jnp.float32)
                    + bout_ref[...])


def _pad_gate_cols(w, H, Hp):
    """(rows, 3H) -> (rows, 3Hp): each [r|z|n] block zero-padded to width Hp."""
    rows = w.shape[0]
    out = jnp.zeros((rows, 3 * Hp), jnp.float32)
    for g in range(3):
        out = out.at[:, g * Hp:g * Hp + H].set(w[:, g * H:(g + 1) * H])
    return out


def pack_params(params):
    """Pad / fold weights ONCE (outside the per-call forward path).

    Padding is exact: padded hidden lanes of h stay 0 for all t, padded whh/wout
    rows are 0, so logits equal the unpadded math (up to bf16 rounding of whh).
    """
    H = params["whh_t"].shape[0]
    Hp = ((H + 127) // 128) * 128

    wih_p = _pad_gate_cols(params["wih_t"].astype(jnp.float32), H, Hp)   # (E, 3Hp)

    whh_p = jnp.zeros((Hp, 3 * Hp), jnp.float32)
    whh_p = whh_p.at[:H, :].set(
        _pad_gate_cols(params["whh_t"].astype(jnp.float32), H, Hp))
    whh_p = whh_p.astype(jnp.bfloat16)                                   # (Hp, 3Hp)

    # Fold b_hr, b_hz into b_ih (linear under sigmoid); keep b_hn separate
    # because it sits inside r * (W_hn h + b_hn) in the PyTorch GRU formula.
    bih = params["bih"].astype(jnp.float32)
    bhh = params["bhh"].astype(jnp.float32)
    bih_fold = jnp.concatenate(
        [bih[:, :2 * H] + bhh[:, :2 * H], bih[:, 2 * H:]], axis=1)       # (1, 3H)
    bihf_p = _pad_gate_cols(bih_fold, H, Hp)                             # (1, 3Hp)
    bhn_p = jnp.zeros((1, Hp), jnp.float32).at[:, :H].set(bhh[:, 2 * H:])

    wout_p = jnp.zeros((Hp, OUT_PAD), jnp.float32).at[:H, :2].set(
        params["wout_t"].astype(jnp.float32))
    bout_p = jnp.zeros((1, OUT_PAD), jnp.float32).at[:, :2].set(
        params["bout"].astype(jnp.float32))

    return {
        "emb": params["embedding"].astype(jnp.float32),
        "wih": wih_p, "whh": whh_p, "bihf": bihf_p, "bhn": bhn_p,
        "wout": wout_p, "bout": bout_p,
    }


def mynet_forward(x_ids, packed):
    """x_ids: (B, T) int32 token ids.  packed: dict from pack_params (called once).
    Returns logits (B, 2) float32."""
    B, T = x_ids.shape
    V, _ = packed["emb"].shape
    Hp = packed["whh"].shape[0]
    TB = T * B

    # Time-major flattened ids (row f = t*B + b) -> matches gi_scratch layout.
    # Only 4*T*B bytes of glue; everything else happens inside the kernel.
    ids_tm = jnp.transpose(x_ids).reshape(TB, 1).astype(jnp.int32)

    kernel = functools.partial(fused_gru_kernel, seq_len=T, batch=B,
                               hidden_pad=Hp, vocab=V)

    vmem_spec = lambda: pl.BlockSpec(memory_space=pltpu.MemorySpace.VMEM)
    out_padded = pl.pallas_call(
        kernel,
        out_shape=jax.ShapeDtypeStruct((B, OUT_PAD), jnp.float32),
        in_specs=[vmem_spec() for _ in range(8)],
        out_specs=vmem_spec(),
        scratch_shapes=[pltpu.VMEM((TB, 3 * Hp), jnp.float32)],  # gi_all
    )(ids_tm, packed["emb"], packed["wih"], packed["whh"], packed["bihf"],
      packed["bhn"], packed["wout"], packed["bout"])

    return out_padded[:, :2]


def init_params(key, maxf, edim, nhid):
    ks = jax.random.split(key, 7)
    scale = 1.0 / jnp.sqrt(nhid)
    return {
        "embedding": jax.random.normal(ks[0], (maxf, edim), jnp.float32),
        # PyTorch stores weight_ih_l0 as (3H, E); we keep the transpose (E, 3H).
        "wih_t": jax.random.uniform(ks[1], (edim, 3 * nhid), jnp.float32, -scale, scale),
        "whh_t": jax.random.uniform(ks[2], (nhid, 3 * nhid), jnp.float32, -scale, scale),
        "bih": jax.random.uniform(ks[3], (1, 3 * nhid), jnp.float32, -scale, scale),
        "bhh": jax.random.uniform(ks[4], (1, 3 * nhid), jnp.float32, -scale, scale),
        "wout_t": jax.random.uniform(ks[5], (nhid, 2), jnp.float32, -scale, scale),
        "bout": jax.random.uniform(ks[6], (1, 2), jnp.float32, -scale, scale),
    }


def reference_forward(x_ids, params):
    """Pure-JAX f32 reference of the same GRU math (module semantics)."""
    x = jnp.take(params["embedding"], x_ids, axis=0)   # (B, T, E)
    B, T, _ = x.shape
    H = params["whh_t"].shape[0]
    h = jnp.zeros((B, H), jnp.float32)
    for t in range(T):
        gi = x[:, t, :] @ params["wih_t"] + params["bih"]
        gh = h @ params["whh_t"] + params["bhh"]
        i_r, i_z, i_n = gi[:, :H], gi[:, H:2 * H], gi[:, 2 * H:]
        h_r, h_z, h_n = gh[:, :H], gh[:, H:2 * H], gh[:, 2 * H:]
        r = jax.nn.sigmoid(i_r + h_r)
        z = jax.nn.sigmoid(i_z + h_z)
        n = jnp.tanh(i_n + r * h_n)
        h = (1.0 - z) * n + z * h
    return h @ params["wout_t"] + params["bout"]


if __name__ == "__main__":
    # Small, module-consistent shapes: batch=8, seq=8, vocab=512, edim=32, nhid=32
    B, T, MAXF, EDIM, NHID = 8, 8, 512, 32, 32

    key = jax.random.PRNGKey(0)
    k_ids, k_params = jax.random.split(key)
    params = init_params(k_params, MAXF, EDIM, NHID)
    x_ids = jax.random.randint(k_ids, (B, T), 0, MAXF, dtype=jnp.int32)

    # Pad / fold weights ONCE; the jitted forward sees only padded device arrays.
    packed = pack_params(params)
    fwd = jax.jit(mynet_forward)

    out = fwd(x_ids, packed)
    out = jax.block_until_ready(out)

    ref = reference_forward(x_ids, params)
    assert out.shape == (B, 2)
    # bf16 W_hh on the recurrent matmul -> compare against the f32 reference
    # with a correspondingly looser tolerance.
    assert jnp.allclose(out, ref, atol=3e-2, rtol=3e-2)

    print("KERNEL_OK")
</pallas_src>

<mosaic_0001>
module attributes {stable_mosaic.version = 11 : i64} {
  func.func @fused_gru_kernel(%arg0: memref<64x1xi32, #tpu.memory_space<vmem>>, %arg1: memref<512x32xf32, #tpu.memory_space<vmem>>, %arg2: memref<32x384xf32, #tpu.memory_space<vmem>>, %arg3: memref<128x384xbf16, #tpu.memory_space<vmem>>, %arg4: memref<1x384xf32, #tpu.memory_space<vmem>>, %arg5: memref<1x128xf32, #tpu.memory_space<vmem>>, %arg6: memref<128x128xf32, #tpu.memory_space<vmem>>, %arg7: memref<1x128xf32, #tpu.memory_space<vmem>>, %arg8: memref<8x128xf32, #tpu.memory_space<vmem>>, %arg9: memref<64x384xf32, #tpu.memory_space<vmem>>) attributes {dimension_semantics = [], scalar_prefetch = 0 : i64, scratch_operands = 1 : i64, tpu.core_type = #tpu.core_type<tc>} {
    %c0 = arith.constant 0 : index
    %c0_0 = arith.constant 0 : index
    %0 = vector.load %arg0[%c0, %c0_0] : memref<64x1xi32, #tpu.memory_space<vmem>>, vector<64x1xi32>
    %1 = tpu.iota {dimensions = array<i32: 1>} : vector<64x512xi32>
    %2 = vector.broadcast %0 : vector<64x1xi32> to vector<64x512xi32>
    %3 = arith.cmpi eq, %2, %1 : vector<64x512xi32>
    %4 = arith.extui %3 : vector<64x512xi1> to vector<64x512xi32>
    %5 = arith.sitofp %4 : vector<64x512xi32> to vector<64x512xf32>
    %c0_1 = arith.constant 0 : index
    %c0_2 = arith.constant 0 : index
    %6 = vector.load %arg1[%c0_1, %c0_2] : memref<512x32xf32, #tpu.memory_space<vmem>>, vector<512x32xf32>
    %cst = arith.constant dense<0.000000e+00> : vector<64x32xf32>
    %7 = tpu.matmul %5, %6, %cst {dimension_numbers = #tpu.dot_dimension_numbers<[1], [0], [0], [1], [0, 0, 1, 1], [], []>} : vector<64x512xf32>, vector<512x32xf32>, vector<64x32xf32> -> vector<64x32xf32>
    %c0_3 = arith.constant 0 : index
    %c0_4 = arith.constant 0 : index
    %8 = vector.load %arg2[%c0_3, %c0_4] : memref<32x384xf32, #tpu.memory_space<vmem>>, vector<32x384xf32>
    %cst_5 = arith.constant dense<0.000000e+00> : vector<64x384xf32>
    %9 = tpu.matmul %7, %8, %cst_5 {dimension_numbers = #tpu.dot_dimension_numbers<[1], [0], [0], [1], [0, 0, 1, 1], [], []>} : vector<64x32xf32>, vector<32x384xf32>, vector<64x384xf32> -> vector<64x384xf32>
    %c0_6 = arith.constant 0 : index
    %c0_7 = arith.constant 0 : index
    %10 = vector.load %arg4[%c0_6, %c0_7] : memref<1x384xf32, #tpu.memory_space<vmem>>, vector<1x384xf32>
    %11 = vector.broadcast %10 : vector<1x384xf32> to vector<64x384xf32>
    %12 = arith.addf %9, %11 : vector<64x384xf32>
    %c0_8 = arith.constant 0 : index
    %c0_9 = arith.constant 0 : index
    %13 = vector.load %arg9[%c0_8, %c0_9] : memref<64x384xf32, #tpu.memory_space<vmem>>, vector<64x384xf32>
    tpu.vector_store %arg9[%c0_8, %c0_9], %12 {strides = array<i32>} : memref<64x384xf32, #tpu.memory_space<vmem>>, vector<64x384xf32>,
    %c0_10 = arith.constant 0 : index
    %c0_11 = arith.constant 0 : index
    %14 = vector.load %arg3[%c0_10, %c0_11] : memref<128x384xbf16, #tpu.memory_space<vmem>>, vector<128x384xbf16>
    %c0_12 = arith.constant 0 : index
    %c0_13 = arith.constant 0 : index
    %15 = vector.load %arg5[%c0_12, %c0_13] : memref<1x128xf32, #tpu.memory_space<vmem>>, vector<1x128xf32>
    %16 = vector.shape_cast %15 : vector<1x128xf32> to vector<1x128xf32>
    %17 = vector.broadcast %16 : vector<1x128xf32> to vector<8x128xf32>
    %c0_14 = arith.constant 0 : index
    %c0_15 = arith.constant 0 : index
    %18 = vector.load %arg9[%c0_14, %c0_15] : memref<64x384xf32, #tpu.memory_space<vmem>>, vector<8x384xf32>
    %19 = vector.extract_strided_slice %18 {offsets = [0, 0], sizes = [8, 128], strides = [1, 1]} : vector<8x384xf32> to vector<8x128xf32>
    %20 = arith.negf %19 : vector<8x128xf32>
    %21 = math.exp %20 : vector<8x128xf32>
    %cst_16 = arith.constant 1.000000e+00 : f32
    %22 = vector.broadcast %cst_16 : f32 to vector<8x128xf32>
    %23 = arith.addf %22, %21 : vector<8x128xf32>
    %24 = arith.divf %22, %23 : vector<8x128xf32>
    %25 = vector.extract_strided_slice %18 {offsets = [0, 128], sizes = [8, 128], strides = [1, 1]} : vector<8x384xf32> to vector<8x128xf32>
    %26 = arith.negf %25 : vector<8x128xf32>
    %27 = math.exp %26 : vector<8x128xf32>
    %cst_17 = arith.constant 1.000000e+00 : f32
    %28 = vector.broadcast %cst_17 : f32 to vector<8x128xf32>
    %29 = arith.addf %28, %27 : vector<8x128xf32>
    %30 = arith.divf %28, %29 : vector<8x128xf32>
    %31 = vector.extract_strided_slice %18 {offsets = [0, 256], sizes = [8, 128], strides = [1, 1]} : vector<8x384xf32> to vector<8x128xf32>
    %32 = arith.mulf %24, %17 : vector<8x128xf32>
    %33 = arith.addf %31, %32 : vector<8x128xf32>
    %34 = math.tanh %33 : vector<8x128xf32>
    %cst_18 = arith.constant 1.000000e+00 : f32
    %35 = vector.broadcast %cst_18 : f32 to vector<8x128xf32>
    %36 = arith.subf %35, %30 : vector<8x128xf32>
    %37 = arith.mulf %36, %34 : vector<8x128xf32>
    %c1_i32 = arith.constant 1 : i32
    %c8_i32 = arith.constant 8 : i32
    %38 = arith.muli %c1_i32, %c8_i32 : i32
    %39 = tpu.assume_multiple %38, 8 : i32
    %40 = arith.index_cast %39 : i32 to index
    %c0_19 = arith.constant 0 : index
    %41 = vector.load %arg9[%40, %c0_19] : memref<64x384xf32, #tpu.memory_space<vmem>>, vector<8x384xf32>
    %42 = arith.truncf %37 : vector<8x128xf32> to vector<8x128xbf16>
    %cst_20 = arith.constant dense<0.000000e+00> : vector<8x384xf32>
    %43 = tpu.matmul %42, %14, %cst_20 {dimension_numbers = #tpu.dot_dimension_numbers<[1], [0], [0], [1], [0, 0, 1, 1], [], []>} : vector<8x128xbf16>, vector<128x384xbf16>, vector<8x384xf32> -> vector<8x384xf32>
    %44 = vector.extract_strided_slice %41 {offsets = [0, 0], sizes = [8, 128], strides = [1, 1]} : vector<8x384xf32> to vector<8x128xf32>
    %45 = vector.extract_strided_slice %43 {offsets = [0, 0], sizes = [8, 128], strides = [1, 1]} : vector<8x384xf32> to vector<8x128xf32>
    %46 = arith.addf %44, %45 : vector<8x128xf32>
    %47 = arith.negf %46 : vector<8x128xf32>
    %48 = math.exp %47 : vector<8x128xf32>
    %cst_21 = arith.constant 1.000000e+00 : f32
    %49 = vector.broadcast %cst_21 : f32 to vector<8x128xf32>
    %50 = arith.addf %49, %48 : vector<8x128xf32>
    %51 = arith.divf %49, %50 : vector<8x128xf32>
    %52 = vector.extract_strided_slice %41 {offsets = [0, 128], sizes = [8, 128], strides = [1, 1]} : vector<8x384xf32> to vector<8x128xf32>
    %53 = vector.extract_strided_slice %43 {offsets = [0, 128], sizes = [8, 128], strides = [1, 1]} : vector<8x384xf32> to vector<8x128xf32>
    %54 = arith.addf %52, %53 : vector<8x128xf32>
    %55 = arith.negf %54 : vector<8x128xf32>
    %56 = math.exp %55 : vector<8x128xf32>
    %cst_22 = arith.constant 1.000000e+00 : f32
    %57 = vector.broadcast %cst_22 : f32 to vector<8x128xf32>
    %58 = arith.addf %57, %56 : vector<8x128xf32>
    %59 = arith.divf %57, %58 : vector<8x128xf32>
    %60 = vector.extract_strided_slice %41 {offsets = [0, 256], sizes = [8, 128], strides = [1, 1]} : vector<8x384xf32> to vector<8x128xf32>
    %61 = vector.extract_strided_slice %43 {offsets = [0, 256], sizes = [8, 128], strides = [1, 1]} : vector<8x384xf32> to vector<8x128xf32>
    %62 = arith.addf %61, %17 : vector<8x128xf32>
    %63 = arith.mulf %51, %62 : vector<8x128xf32>
    %64 = arith.addf %60, %63 : vector<8x128xf32>
    %65 = math.tanh %64 : vector<8x128xf32>
    %cst_23 = arith.constant 1.000000e+00 : f32
    %66 = vector.broadcast %cst_23 : f32 to vector<8x128xf32>
    %67 = arith.subf %66, %59 : vector<8x128xf32>
    %68 = arith.mulf %67, %65 : vector<8x128xf32>
    %69 = arith.mulf %59, %37 : vector<8x128xf32>
    %70 = arith.addf %68, %69 : vector<8x128xf32>
    %c2_i32 = arith.constant 2 : i32
    %c8_i32_24 = arith.constant 8 : i32
    %71 = arith.muli %c2_i32, %c8_i32_24 : i32
    %72 = tpu.assume_multiple %71, 8 : i32
    %73 = arith.index_cast %72 : i32 to index
    %c0_25 = arith.constant 0 : index
    %74 = vector.load %arg9[%73, %c0_25] : memref<64x384xf32, #tpu.memory_space<vmem>>, vector<8x384xf32>
    %75 = arith.truncf %70 : vector<8x128xf32> to vector<8x128xbf16>
    %cst_26 = arith.constant dense<0.000000e+00> : vector<8x384xf32>
    %76 = tpu.matmul %75, %14, %cst_26 {dimension_numbers = #tpu.dot_dimension_numbers<[1], [0], [0], [1], [0, 0, 1, 1], [], []>} : vector<8x128xbf16>, vector<128x384xbf16>, vector<8x384xf32> -> vector<8x384xf32>
    %77 = vector.extract_strided_slice %74 {offsets = [0, 0], sizes = [8, 128], strides = [1, 1]} : vector<8x384xf32> to vector<8x128xf32>
    %78 = vector.extract_strided_slice %76 {offsets = [0, 0], sizes = [8, 128], strides = [1, 1]} : vector<8x384xf32> to vector<8x128xf32>
    %79 = arith.addf %77, %78 : vector<8x128xf32>
    %80 = arith.negf %79 : vector<8x128xf32>
    %81 = math.exp %80 : vector<8x128xf32>
    %cst_27 = arith.constant 1.000000e+00 : f32
    %82 = vector.broadcast %cst_27 : f32 to vector<8x128xf32>
    %83 = arith.addf %82, %81 : vector<8x128xf32>
    %84 = arith.divf %82, %83 : vector<8x128xf32>
    %85 = vector.extract_strided_slice %74 {offsets = [0, 128], sizes = [8, 128], strides = [1, 1]} : vector<8x384xf32> to vector<8x128xf32>
    %86 = vector.extract_strided_slice %76 {offsets = [0, 128], sizes = [8, 128], strides = [1, 1]} : vector<8x384xf32> to vector<8x128xf32>
    %87 = arith.addf %85, %86 : vector<8x128xf32>
    %88 = arith.negf %87 : vector<8x128xf32>
    %89 = math.exp %88 : vector<8x128xf32>
    %cst_28 = arith.constant 1.000000e+00 : f32
    %90 = vector.broadcast %cst_28 : f32 to vector<8x128xf32>
    %91 = arith.addf %90, %89 : vector<8x128xf32>
    %92 = arith.divf %90, %91 : vector<8x128xf32>
    %93 = vector.extract_strided_slice %74 {offsets = [0, 256], sizes = [8, 128], strides = [1, 1]} : vector<8x384xf32> to vector<8x128xf32>
    %94 = vector.extract_strided_slice %76 {offsets = [0, 256], sizes = [8, 128], strides = [1, 1]} : vector<8x384xf32> to vector<8x128xf32>
    %95 = arith.addf %94, %17 : vector<8x128xf32>
    %96 = arith.mulf %84, %95 : vector<8x128xf32>
    %97 = arith.addf %93, %96 : vector<8x128xf32>
    %98 = math.tanh %97 : vector<8x128xf32>
    %cst_29 = arith.constant 1.000000e+00 : f32
    %99 = vector.broadcast %cst_29 : f32 to vector<8x128xf32>
    %100 = arith.subf %99, %92 : vector<8x128xf32>
    %101 = arith.mulf %100, %98 : vector<8x128xf32>
    %102 = arith.mulf %92, %70 : vector<8x128xf32>
    %103 = arith.addf %101, %102 : vector<8x128xf32>
    %c3_i32 = arith.constant 3 : i32
    %c8_i32_30 = arith.constant 8 : i32
    %104 = arith.muli %c3_i32, %c8_i32_30 : i32
    %105 = tpu.assume_multiple %104, 8 : i32
    %106 = arith.index_cast %105 : i32 to index
    %c0_31 = arith.constant 0 : index
    %107 = vector.load %arg9[%106, %c0_31] : memref<64x384xf32, #tpu.memory_space<vmem>>, vector<8x384xf32>
    %108 = arith.truncf %103 : vector<8x128xf32> to vector<8x128xbf16>
    %cst_32 = arith.constant dense<0.000000e+00> : vector<8x384xf32>
    %109 = tpu.matmul %108, %14, %cst_32 {dimension_numbers = #tpu.dot_dimension_numbers<[1], [0], [0], [1], [0, 0, 1, 1], [], []>} : vector<8x128xbf16>, vector<128x384xbf16>, vector<8x384xf32> -> vector<8x384xf32>
    %110 = vector.extract_strided_slice %107 {offsets = [0, 0], sizes = [8, 128], strides = [1, 1]} : vector<8x384xf32> to vector<8x128xf32>
    %111 = vector.extract_strided_slice %109 {offsets = [0, 0], sizes = [8, 128], strides = [1, 1]} : vector<8x384xf32> to vector<8x128xf32>
    %112 = arith.addf %110, %111 : vector<8x128xf32>
    %113 = arith.negf %112 : vector<8x128xf32>
    %114 = math.exp %113 : vector<8x128xf32>
    %cst_33 = arith.constant 1.000000e+00 : f32
    %115 = vector.broadcast %cst_33 : f32 to vector<8x128xf32>
    %116 = arith.addf %115, %114 : vector<8x128xf32>
    %117 = arith.divf %115, %116 : vector<8x128xf32>
    %118 = vector.extract_strided_slice %107 {offsets = [0, 128], sizes = [8, 128], strides = [1, 1]} : vector<8x384xf32> to vector<8x128xf32>
    %119 = vector.extract_strided_slice %109 {offsets = [0, 128], sizes = [8, 128], strides = [1, 1]} : vector<8x384xf32> to vector<8x128xf32>
    %120 = arith.addf %118, %119 : vector<8x128xf32>
    %121 = arith.negf %120 : vector<8x128xf32>
    %122 = math.exp %121 : vector<8x128xf32>
    %cst_34 = arith.constant 1.000000e+00 : f32
    %123 = vector.broadcast %cst_34 : f32 to vector<8x128xf32>
    %124 = arith.addf %123, %122 : vector<8x128xf32>
    %125 = arith.divf %123, %124 : vector<8x128xf32>
    %126 = vector.extract_strided_slice %107 {offsets = [0, 256], sizes = [8, 128], strides = [1, 1]} : vector<8x384xf32> to vector<8x128xf32>
    %127 = vector.extract_strided_slice %109 {offsets = [0, 256], sizes = [8, 128], strides = [1, 1]} : vector<8x384xf32> to vector<8x128xf32>
    %128 = arith.addf %127, %17 : vector<8x128xf32>
    %129 = arith.mulf %117, %128 : vector<8x128xf32>
    %130 = arith.addf %126, %129 : vector<8x128xf32>
    %131 = math.tanh %130 : vector<8x128xf32>
    %cst_35 = arith.constant 1.000000e+00 : f32
    %132 = vector.broadcast %cst_35 : f32 to vector<8x128xf32>
    %133 = arith.subf %132, %125 : vector<8x128xf32>
    %134 = arith.mulf %133, %131 : vector<8x128xf32>
    %135 = arith.mulf %125, %103 : vector<8x128xf32>
    %136 = arith.addf %134, %135 : vector<8x128xf32>
    %c4_i32 = arith.constant 4 : i32
    %c8_i32_36 = arith.constant 8 : i32
    %137 = arith.muli %c4_i32, %c8_i32_36 : i32
    %138 = tpu.assume_multiple %137, 8 : i32
    %139 = arith.index_cast %138 : i32 to index
    %c0_37 = arith.constant 0 : index
    %140 = vector.load %arg9[%139, %c0_37] : memref<64x384xf32, #tpu.memory_space<vmem>>, vector<8x384xf32>
    %141 = arith.truncf %136 : vector<8x128xf32> to vector<8x128xbf16>
    %cst_38 = arith.constant dense<0.000000e+00> : vector<8x384xf32>
    %142 = tpu.matmul %141, %14, %cst_38 {dimension_numbers = #tpu.dot_dimension_numbers<[1], [0], [0], [1], [0, 0, 1, 1], [], []>} : vector<8x128xbf16>, vector<128x384xbf16>, vector<8x384xf32> -> vector<8x384xf32>
    %143 = vector.extract_strided_slice %140 {offsets = [0, 0], sizes = [8, 128], strides = [1, 1]} : vector<8x384xf32> to vector<8x128xf32>
    %144 = vector.extract_strided_slice %142 {offsets = [0, 0], sizes = [8, 128], strides = [1, 1]} : vector<8x384xf32> to vector<8x128xf32>
    %145 = arith.addf %143, %144 : vector<8x128xf32>
    %146 = arith.negf %145 : vector<8x128xf32>
    %147 = math.exp %146 : vector<8x128xf32>
    %cst_39 = arith.constant 1.000000e+00 : f32
    %148 = vector.broadcast %cst_39 : f32 to vector<8x128xf32>
    %149 = arith.addf %148, %147 : vector<8x128xf32>
    %150 = arith.divf %148, %149 : vector<8x128xf32>
    %151 = vector.extract_strided_slice %140 {offsets = [0, 128], sizes = [8, 128], strides = [1, 1]} : vector<8x384xf32> to vector<8x128xf32>
    %152 = vector.extract_strided_slice %142 {offsets = [0, 128], sizes = [8, 128], strides = [1, 1]} : vector<8x384xf32> to vector<8x128xf32>
    %153 = arith.addf %151, %152 : vector<8x128xf32>
    %154 = arith.negf %153 : vector<8x128xf32>
    %155 = math.exp %154 : vector<8x128xf32>
    %cst_40 = arith.constant 1.000000e+00 : f32
    %156 = vector.broadcast %cst_40 : f32 to vector<8x128xf32>
    %157 = arith.addf %156, %155 : vector<8x128xf32>
    %158 = arith.divf %156, %157 : vector<8x128xf32>
    %159 = vector.extract_strided_slice %140 {offsets = [0, 256], sizes = [8, 128], strides = [1, 1]} : vector<8x384xf32> to vector<8x128xf32>
    %160 = vector.extract_strided_slice %142 {offsets = [0, 256], sizes = [8, 128], strides = [1, 1]} : vector<8x384xf32> to vector<8x128xf32>
    %161 = arith.addf %160, %17 : vector<8x128xf32>
    %162 = arith.mulf %150, %161 : vector<8x128xf32>
    %163 = arith.addf %159, %162 : vector<8x128xf32>
    %164 = math.tanh %163 : vector<8x128xf32>
    %cst_41 = arith.constant 1.000000e+00 : f32
    %165 = vector.broadcast %cst_41 : f32 to vector<8x128xf32>
    %166 = arith.subf %165, %158 : vector<8x128xf32>
    %167 = arith.mulf %166, %164 : vector<8x128xf32>
    %168 = arith.mulf %158, %136 : vector<8x128xf32>
    %169 = arith.addf %167, %168 : vector<8x128xf32>
    %c5_i32 = arith.constant 5 : i32
    %c8_i32_42 = arith.constant 8 : i32
    %170 = arith.muli %c5_i32, %c8_i32_42 : i32
    %171 = tpu.assume_multiple %170, 8 : i32
    %172 = arith.index_cast %171 : i32 to index
    %c0_43 = arith.constant 0 : index
    %173 = vector.load %arg9[%172, %c0_43] : memref<64x384xf32, #tpu.memory_space<vmem>>, vector<8x384xf32>
    %174 = arith.truncf %169 : vector<8x128xf32> to vector<8x128xbf16>
    %cst_44 = arith.constant dense<0.000000e+00> : vector<8x384xf32>
    %175 = tpu.matmul %174, %14, %cst_44 {dimension_numbers = #tpu.dot_dimension_numbers<[1], [0], [0], [1], [0, 0, 1, 1], [], []>} : vector<8x128xbf16>, vector<128x384xbf16>, vector<8x384xf32> -> vector<8x384xf32>
    %176 = vector.extract_strided_slice %173 {offsets = [0, 0], sizes = [8, 128], strides = [1, 1]} : vector<8x384xf32> to vector<8x128xf32>
    %177 = vector.extract_strided_slice %175 {offsets = [0, 0], sizes = [8, 128], strides = [1, 1]} : vector<8x384xf32> to vector<8x128xf32>
    %178 = arith.addf %176, %177 : vector<8x128xf32>
    %179 = arith.negf %178 : vector<8x128xf32>
    %180 = math.exp %179 : vector<8x128xf32>
    %cst_45 = arith.constant 1.000000e+00 : f32
    %181 = vector.broadcast %cst_45 : f32 to vector<8x128xf32>
    %182 = arith.addf %181, %180 : vector<8x128xf32>
    %183 = arith.divf %181, %182 : vector<8x128xf32>
    %184 = vector.extract_strided_slice %173 {offsets = [0, 128], sizes = [8, 128], strides = [1, 1]} : vector<8x384xf32> to vector<8x128xf32>
    %185 = vector.extract_strided_slice %175 {offsets = [0, 128], sizes = [8, 128], strides = [1, 1]} : vector<8x384xf32> to vector<8x128xf32>
    %186 = arith.addf %184, %185 : vector<8x128xf32>
    %187 = arith.negf %186 : vector<8x128xf32>
    %188 = math.exp %187 : vector<8x128xf32>
    %cst_46 = arith.constant 1.000000e+00 : f32
    %189 = vector.broadcast %cst_46 : f32 to vector<8x128xf32>
    %190 = arith.addf %189, %188 : vector<8x128xf32>
    %191 = arith.divf %189, %190 : vector<8x128xf32>
    %192 = vector.extract_strided_slice %173 {offsets = [0, 256], sizes = [8, 128], strides = [1, 1]} : vector<8x384xf32> to vector<8x128xf32>
    %193 = vector.extract_strided_slice %175 {offsets = [0, 256], sizes = [8, 128], strides = [1, 1]} : vector<8x384xf32> to vector<8x128xf32>
    %194 = arith.addf %193, %17 : vector<8x128xf32>
    %195 = arith.mulf %183, %194 : vector<8x128xf32>
    %196 = arith.addf %192, %195 : vector<8x128xf32>
    %197 = math.tanh %196 : vector<8x128xf32>
    %cst_47 = arith.constant 1.000000e+00 : f32
    %198 = vector.broadcast %cst_47 : f32 to vector<8x128xf32>
    %199 = arith.subf %198, %191 : vector<8x128xf32>
    %200 = arith.mulf %199, %197 : vector<8x128xf32>
    %201 = arith.mulf %191, %169 : vector<8x128xf32>
    %202 = arith.addf %200, %201 : vector<8x128xf32>
    %c6_i32 = arith.constant 6 : i32
    %c8_i32_48 = arith.constant 8 : i32
    %203 = arith.muli %c6_i32, %c8_i32_48 : i32
    %204 = tpu.assume_multiple %203, 8 : i32
    %205 = arith.index_cast %204 : i32 to index
    %c0_49 = arith.constant 0 : index
    %206 = vector.load %arg9[%205, %c0_49] : memref<64x384xf32, #tpu.memory_space<vmem>>, vector<8x384xf32>
    %207 = arith.truncf %202 : vector<8x128xf32> to vector<8x128xbf16>
    %cst_50 = arith.constant dense<0.000000e+00> : vector<8x384xf32>
    %208 = tpu.matmul %207, %14, %cst_50 {dimension_numbers = #tpu.dot_dimension_numbers<[1], [0], [0], [1], [0, 0, 1, 1], [], []>} : vector<8x128xbf16>, vector<128x384xbf16>, vector<8x384xf32> -> vector<8x384xf32>
    %209 = vector.extract_strided_slice %206 {offsets = [0, 0], sizes = [8, 128], strides = [1, 1]} : vector<8x384xf32> to vector<8x128xf32>
    %210 = vector.extract_strided_slice %208 {offsets = [0, 0], sizes = [8, 128], strides = [1, 1]} : vector<8x384xf32> to vector<8x128xf32>
    %211 = arith.addf %209, %210 : vector<8x128xf32>
    %212 = arith.negf %211 : vector<8x128xf32>
    %213 = math.exp %212 : vector<8x128xf32>
    %cst_51 = arith.constant 1.000000e+00 : f32
    %214 = vector.broadcast %cst_51 : f32 to vector<8x128xf32>
    %215 = arith.addf %214, %213 : vector<8x128xf32>
    %216 = arith.divf %214, %215 : vector<8x128xf32>
    %217 = vector.extract_strided_slice %206 {offsets = [0, 128], sizes = [8, 128], strides = [1, 1]} : vector<8x384xf32> to vector<8x128xf32>
    %218 = vector.extract_strided_slice %208 {offsets = [0, 128], sizes = [8, 128], strides = [1, 1]} : vector<8x384xf32> to vector<8x128xf32>
    %219 = arith.addf %217, %218 : vector<8x128xf32>
    %220 = arith.negf %219 : vector<8x128xf32>
    %221 = math.exp %220 : vector<8x128xf32>
    %cst_52 = arith.constant 1.000000e+00 : f32
    %222 = vector.broadcast %cst_52 : f32 to vector<8x128xf32>
    %223 = arith.addf %222, %221 : vector<8x128xf32>
    %224 = arith.divf %222, %223 : vector<8x128xf32>
    %225 = vector.extract_strided_slice %206 {offsets = [0, 256], sizes = [8, 128], strides = [1, 1]} : vector<8x384xf32> to vector<8x128xf32>
    %226 = vector.extract_strided_slice %208 {offsets = [0, 256], sizes = [8, 128], strides = [1, 1]} : vector<8x384xf32> to vector<8x128xf32>
    %227 = arith.addf %226, %17 : vector<8x128xf32>
    %228 = arith.mulf %216, %227 : vector<8x128xf32>
    %229 = arith.addf %225, %228 : vector<8x128xf32>
    %230 = math.tanh %229 : vector<8x128xf32>
    %cst_53 = arith.constant 1.000000e+00 : f32
    %231 = vector.broadcast %cst_53 : f32 to vector<8x128xf32>
    %232 = arith.subf %231, %224 : vector<8x128xf32>
    %233 = arith.mulf %232, %230 : vector<8x128xf32>
    %234 = arith.mulf %224, %202 : vector<8x128xf32>
    %235 = arith.addf %233, %234 : vector<8x128xf32>
    %c7_i32 = arith.constant 7 : i32
    %c8_i32_54 = arith.constant 8 : i32
    %236 = arith.muli %c7_i32, %c8_i32_54 : i32
    %237 = tpu.assume_multiple %236, 8 : i32
    %238 = arith.index_cast %237 : i32 to index
    %c0_55 = arith.constant 0 : index
    %239 = vector.load %arg9[%238, %c0_55] : memref<64x384xf32, #tpu.memory_space<vmem>>, vector<8x384xf32>
    %240 = arith.truncf %235 : vector<8x128xf32> to vector<8x128xbf16>
    %cst_56 = arith.constant dense<0.000000e+00> : vector<8x384xf32>
    %241 = tpu.matmul %240, %14, %cst_56 {dimension_numbers = #tpu.dot_dimension_numbers<[1], [0], [0], [1], [0, 0, 1, 1], [], []>} : vector<8x128xbf16>, vector<128x384xbf16>, vector<8x384xf32> -> vector<8x384xf32>
    %242 = vector.extract_strided_slice %239 {offsets = [0, 0], sizes = [8, 128], strides = [1, 1]} : vector<8x384xf32> to vector<8x128xf32>
    %243 = vector.extract_strided_slice %241 {offsets = [0, 0], sizes = [8, 128], strides = [1, 1]} : vector<8x384xf32> to vector<8x128xf32>
    %244 = arith.addf %242, %243 : vector<8x128xf32>
    %245 = arith.negf %244 : vector<8x128xf32>
    %246 = math.exp %245 : vector<8x128xf32>
    %cst_57 = arith.constant 1.000000e+00 : f32
    %247 = vector.broadcast %cst_57 : f32 to vector<8x128xf32>
    %248 = arith.addf %247, %246 : vector<8x128xf32>
    %249 = arith.divf %247, %248 : vector<8x128xf32>
    %250 = vector.extract_strided_slice %239 {offsets = [0, 128], sizes = [8, 128], strides = [1, 1]} : vector<8x384xf32> to vector<8x128xf32>
    %251 = vector.extract_strided_slice %241 {offsets = [0, 128], sizes = [8, 128], strides = [1, 1]} : vector<8x384xf32> to vector<8x128xf32>
    %252 = arith.addf %250, %251 : vector<8x128xf32>
    %253 = arith.negf %252 : vector<8x128xf32>
    %254 = math.exp %253 : vector<8x128xf32>
    %cst_58 = arith.constant 1.000000e+00 : f32
    %255 = vector.broadcast %cst_58 : f32 to vector<8x128xf32>
    %256 = arith.addf %255, %254 : vector<8x128xf32>
    %257 = arith.divf %255, %256 : vector<8x128xf32>
    %258 = vector.extract_strided_slice %239 {offsets = [0, 256], sizes = [8, 128], strides = [1, 1]} : vector<8x384xf32> to vector<8x128xf32>
    %259 = vector.extract_strided_slice %241 {offsets = [0, 256], sizes = [8, 128], strides = [1, 1]} : vector<8x384xf32> to vector<8x128xf32>
    %260 = arith.addf %259, %17 : vector<8x128xf32>
    %261 = arith.mulf %249, %260 : vector<8x128xf32>
    %262 = arith.addf %258, %261 : vector<8x128xf32>
    %263 = math.tanh %262 : vector<8x128xf32>
    %cst_59 = arith.constant 1.000000e+00 : f32
    %264 = vector.broadcast %cst_59 : f32 to vector<8x128xf32>
    %265 = arith.subf %264, %257 : vector<8x128xf32>
    %266 = arith.mulf %265, %263 : vector<8x128xf32>
    %267 = arith.mulf %257, %235 : vector<8x128xf32>
    %268 = arith.addf %266, %267 : vector<8x128xf32>
    %c7_i32_60 = arith.constant 7 : i32
    %c0_61 = arith.constant 0 : index
    %c0_62 = arith.constant 0 : index
    %269 = vector.load %arg6[%c0_61, %c0_62] : memref<128x128xf32, #tpu.memory_space<vmem>>, vector<128x128xf32>
    %cst_63 = arith.constant dense<0.000000e+00> : vector<8x128xf32>
    %270 = tpu.matmul %268, %269, %cst_63 {dimension_numbers = #tpu.dot_dimension_numbers<[1], [0], [0], [1], [0, 0, 1, 1], [], []>} : vector<8x128xf32>, vector<128x128xf32>, vector<8x128xf32> -> vector<8x128xf32>
    %c0_64 = arith.constant 0 : index
    %c0_65 = arith.constant 0 : index
    %271 = vector.load %arg7[%c0_64, %c0_65] : memref<1x128xf32, #tpu.memory_space<vmem>>, vector<1x128xf32>
    %272 = vector.broadcast %271 : vector<1x128xf32> to vector<8x128xf32>
    %273 = arith.addf %270, %272 : vector<8x128xf32>
    %c0_66 = arith.constant 0 : index
    %c0_67 = arith.constant 0 : index
    %274 = vector.load %arg8[%c0_66, %c0_67] : memref<8x128xf32, #tpu.memory_space<vmem>>, vector<8x128xf32>
    tpu.vector_store %arg8[%c0_66, %c0_67], %273 {strides = array<i32>} : memref<8x128xf32, #tpu.memory_space<vmem>>, vector<8x128xf32>,
    return
  }
}

</mosaic_0001>

<bundles_post_ra>
// kernel: mynet_forward.1
= control target key start
LH: loop header
LB: loop body
LE: loop exit
PB: predicated region body
PF: predicated region fallthrough
CT: control target
= control target key end

     0   :  { %v1814_v0 = vmov 0   ;;  %s2791_s0 = inlined_call_operand.vmem [shape: s32[64,1], index: 0, kind: input, shape index: {}]   ;;  %s2792_s1 = inlined_call_operand.vmem [shape: f32[512,32], index: 1, kind: input, shape index: {}]   ;;  %s2793_s2 = inlined_call_operand.vmem [shape: f32[32,384], index: 2, kind: input, shape index: {}]   ;;  %s2794_s5 = inlined_call_operand.vmem [shape: f32[1,128], index: 5, kind: input, shape index: {}]   ;;  %s2795_s3 = inlined_call_operand.vmem [shape: bf16[128,384], index: 3, kind: input, shape index: {}]   ;;  %s2796_s4 = inlined_call_operand.vmem [shape: f32[1,384], index: 4, kind: input, shape index: {}]   ;;  %s2797_s7 = inlined_call_operand.vmem [shape: f32[1,128], index: 7, kind: input, shape index: {}]   ;;  %s2798_s6 = inlined_call_operand.vmem [shape: f32[128,128], index: 6, kind: input, shape index: {}]   ;;  %s2799_s8 = inlined_call_operand.vmem [shape: f32[8,128], index: 8, kind: output, shape index: {}]  }
   0x1   :  { %1728 = vset.pattern.permute.xlu0 %v1814_v0  ;;  %v29_v1 = vld [vmem:[%s2791_s0] sm:$0xff]  ;;  %1729 = vset.pattern.permute.xlu1 %v1814_v0  ;;  %v31_v2 = vld [vmem:[%s2791_s0 + $0x10] sm:$0xff]  ;;  %v177_v4 = vld [vmem:[%s2792_s1 + $0x78] sm:$0xff] }
   0x2   :  { %43 = vperm.xlu0 %1728, %v29_v1   ;;  %49 = vperm.xlu1 %1729, %v31_v2   ;;  %v33_v3 = vld [vmem:[%s2791_s0 + $0x20] sm:$0xff]  ;;  %v193_v5 = vld [vmem:[%s2792_s1 + $0xf8] sm:$0xff]  ;;  %v176_v8 = vld [vmem:[%s2792_s1 + $0x70] sm:$0xff] }
   0x3   :  { %1730 = vset.pattern.permute.xlu2 %v1814_v0  ;;  %226 = vmatpush.msra.mxu0 %v177_v4  ;;  %v209_v6 = vld [vmem:[%s2792_s1 + $0x178] sm:$0xff]  ;;  %v192_v9 = vld [vmem:[%s2792_s1 + $0xf0] sm:$0xff]  ;;  %v175_v12 = vld [vmem:[%s2792_s1 + $0x68] sm:$0xff] }
   0x4   :  { %55 = vperm.xlu2 %1730, %v33_v3   ;;  %v225_v7 = vld [vmem:[%s2792_s1 + $0x1f8] sm:$0xff]  ;;  %267 = vmatpush.msra.mxu1 %v193_v5  ;;  %v208_v10 = vld [vmem:[%s2792_s1 + $0x170] sm:$0xff]  ;;  %v191_v13 = vld [vmem:[%s2792_s1 + $0xe8] sm:$0xff] }
   0x5   :  { %308 = vmatpush.msra.mxu2 %v209_v6  ;;  %349 = vmatpush.msra.mxu3 %v225_v7  ;;  %v224_v11 = vld [vmem:[%s2792_s1 + $0x1f0] sm:$0xff]  ;;  %v30_v14 = vld [vmem:[%s2791_s0 + $0x8] sm:$0xff]  ;;  %v32_v15 = vld [vmem:[%s2791_s0 + $0x18] sm:$0xff] }
   0x6   :  { %227 = vmatpush.msra.mxu0 %v176_v8  ;;  %268 = vmatpush.msra.mxu1 %v192_v9  ;;  %v207_v16 = vld [vmem:[%s2792_s1 + $0x168] sm:$0xff]  ;;  %v174_v18 = vld [vmem:[%s2792_s1 + $0x60] sm:$0xff]  ;;  %v173_v23 = vld [vmem:[%s2792_s1 + $0x58] sm:$0xff]  ;;  %v37_v9 = vlaneseq }
   0x7   :  { %309 = vmatpush.msra.mxu2 %v208_v10  ;;  %350 = vmatpush.msra.mxu3 %v224_v11  ;;  %v223_v17 = vld [vmem:[%s2792_s1 + $0x1e8] sm:$0xff]  ;;  %v190_v20 = vld [vmem:[%s2792_s1 + $0xe0] sm:$0xff]  ;;  %v189_v24 = vld [vmem:[%s2792_s1 + $0xd8] sm:$0xff] }
   0x8   :  { %228 = vmatpush.msra.mxu0 %v175_v12  ;;  %v34_v19 = vld [vmem:[%s2791_s0 + $0x28] sm:$0xff]  ;;  %269 = vmatpush.msra.mxu1 %v191_v13  ;;  %v206_v21 = vld [vmem:[%s2792_s1 + $0x160] sm:$0xff]  ;;  %v205_v25 = vld [vmem:[%s2792_s1 + $0x158] sm:$0xff]  ;;  %v2077_v10 = vand.u32 127, %v37_v9 }
   0x9   :  { %310 = vmatpush.msra.mxu2 %v207_v16  ;;  %v222_v22 = vld [vmem:[%s2792_s1 + $0x1e0] sm:$0xff]  ;;  %351 = vmatpush.msra.mxu3 %v223_v17  ;;  %v221_v26 = vld [vmem:[%s2792_s1 + $0x1d8] sm:$0xff]  ;;  %v172_v27 = vld [vmem:[%s2792_s1 + $0x50] sm:$0xff] }
   0xa   :  { %46 = vperm.xlu0 %1728, %v30_v14   ;;  %52 = vperm.xlu1 %1729, %v32_v15   ;;  %v188_v28 = vld [vmem:[%s2792_s1 + $0xd0] sm:$0xff]  ;;  %v36_v32 = vld [vmem:[%s2791_s0 + $0x38] sm:$0xff]  ;;  %v171_v33 = vld [vmem:[%s2792_s1 + $0x48] sm:$0xff]  ;;  %v2080_v11 = vadd.s32 128, %v2077_v10  ;;  %v2083_v12 = vadd.s32 256, %v2077_v10  ;;  %v2086_v13 = vadd.s32 384, %v2077_v10 }
   0xb   :  { %229 = vmatpush.msra.mxu0 %v174_v18  ;;  %270 = vmatpush.msra.mxu1 %v190_v20  ;;  %v204_v29 = vld [vmem:[%s2792_s1 + $0x150] sm:$0xff]  ;;  %v187_v34 = vld [vmem:[%s2792_s1 + $0xc8] sm:$0xff]  ;;  %v170_v37 = vld [vmem:[%s2792_s1 + $0x40] sm:$0xff]  ;;  %v1815_v15 = vmov 1.0  }
   0xc   :  { %58 = vperm.xlu2 %1730, %v34_v19   ;;  %311 = vmatpush.msra.mxu2 %v206_v21  ;;  %v220_v30 = vld [vmem:[%s2792_s1 + $0x1d0] sm:$0xff]  ;;  %v203_v35 = vld [vmem:[%s2792_s1 + $0x148] sm:$0xff]  ;;  %v186_v38 = vld [vmem:[%s2792_s1 + $0xc0] sm:$0xff] }
   0xd   :  { %352 = vmatpush.msra.mxu3 %v222_v22  ;;  %230 = vmatpush.msra.mxu0 %v173_v23  ;;  %v35_v31 = vld [vmem:[%s2791_s0 + $0x30] sm:$0xff]  ;;  %v219_v36 = vld [vmem:[%s2792_s1 + $0x1c8] sm:$0xff]  ;;  %v202_v39 = vld [vmem:[%s2792_s1 + $0x140] sm:$0xff] }
   0xe   :  { %271 = vmatpush.msra.mxu1 %v189_v24  ;;  %312 = vmatpush.msra.mxu2 %v205_v25  ;;  %v218_v40 = vld [vmem:[%s2792_s1 + $0x1c0] sm:$0xff]  ;;  %v169_v41 = vld [vmem:[%s2792_s1 + $0x38] sm:$0xff]  ;;  %v168_v45 = vld [vmem:[%s2792_s1 + $0x30] sm:$0xff] }
   0xf   :  { %353 = vmatpush.msra.mxu3 %v221_v26  ;;  %231 = vmatpush.msra.mxu0 %v172_v27  ;;  %v185_v42 = vld [vmem:[%s2792_s1 + $0xb8] sm:$0xff]  ;;  %v184_v46 = vld [vmem:[%s2792_s1 + $0xb0] sm:$0xff]  ;;  %v167_v49 = vld [vmem:[%s2792_s1 + $0x28] sm:$0xff] }
  0x10   :  { %272 = vmatpush.msra.mxu1 %v188_v28  ;;  %313 = vmatpush.msra.mxu2 %v204_v29  ;;  %v201_v43 = vld [vmem:[%s2792_s1 + $0x138] sm:$0xff]  ;;  %v200_v47 = vld [vmem:[%s2792_s1 + $0x130] sm:$0xff]  ;;  %v183_v50 = vld [vmem:[%s2792_s1 + $0xa8] sm:$0xff] }
  0x11   :  { %354 = vmatpush.msra.mxu3 %v220_v30  ;;  %232 = vmatpush.msra.mxu0 %v171_v33  ;;  %v217_v44 = vld [vmem:[%s2792_s1 + $0x1b8] sm:$0xff]  ;;  %v216_v48 = vld [vmem:[%s2792_s1 + $0x1b0] sm:$0xff]  ;;  %v199_v51 = vld [vmem:[%s2792_s1 + $0x128] sm:$0xff] }
  0x12   :  { %61 = vperm.xlu0 %1728, %v35_v31   ;;  %64 = vperm.xlu1 %1729, %v36_v32   ;;  %v215_v52 = vld [vmem:[%s2792_s1 + $0x1a8] sm:$0xff]  ;;  %v166_v53 = vld [vmem:[%s2792_s1 + $0x20] sm:$0xff]  ;;  %v165_v57 = vld [vmem:[%s2792_s1 + $0x18] sm:$0xff] }
  0x13   :  { %273 = vmatpush.msra.mxu1 %v187_v34  ;;  %314 = vmatpush.msra.mxu2 %v203_v35  ;;  %v182_v54 = vld [vmem:[%s2792_s1 + $0xa0] sm:$0xff]  ;;  %v181_v58 = vld [vmem:[%s2792_s1 + $0x98] sm:$0xff]  ;;  %v164_v61 = vld [vmem:[%s2792_s1 + $0x10] sm:$0xff] }
  0x14   :  { %355 = vmatpush.msra.mxu3 %v219_v36  ;;  %233 = vmatpush.msra.mxu0 %v170_v37  ;;  %v198_v55 = vld [vmem:[%s2792_s1 + $0x120] sm:$0xff]  ;;  %v197_v59 = vld [vmem:[%s2792_s1 + $0x118] sm:$0xff]  ;;  %v180_v62 = vld [vmem:[%s2792_s1 + $0x90] sm:$0xff] }
  0x15   :  { %274 = vmatpush.msra.mxu1 %v186_v38  ;;  %315 = vmatpush.msra.mxu2 %v202_v39  ;;  %v214_v56 = vld [vmem:[%s2792_s1 + $0x1a0] sm:$0xff]  ;;  %v213_v60 = vld [vmem:[%s2792_s1 + $0x198] sm:$0xff]  ;;  %v196_v63 = vld [vmem:[%s2792_s1 + $0x110] sm:$0xff] }
  0x16   :  { %356 = vmatpush.msra.mxu3 %v218_v40  ;;  %234 = vmatpush.msra.mxu0 %v169_v41  ;;  %v212_v0 = vld [vmem:[%s2792_s1 + $0x190] sm:$0xff]  ;;  %v163_v1 = vld [vmem:[%s2792_s1 + $0x8] sm:$0xff]  ;;  %v162_v5 = vld [vmem:[%s2792_s1] sm:$0xff] }
  0x17   :  { %275 = vmatpush.msra.mxu1 %v185_v42  ;;  %316 = vmatpush.msra.mxu2 %v201_v43  ;;  %v179_v2 = vld [vmem:[%s2792_s1 + $0x88] sm:$0xff]  ;;  %v178_v6 = vld [vmem:[%s2792_s1 + $0x80] sm:$0xff]  ;;  %v400_v19 = vld [vmem:[%s2793_s2 + $0x50] sm:$0xff] }
  0x18   :  { %357 = vmatpush.msra.mxu3 %v217_v44  ;;  %235 = vmatpush.msra.mxu0 %v168_v45  ;;  %v195_v3 = vld [vmem:[%s2792_s1 + $0x108] sm:$0xff]  ;;  %v194_v7 = vld [vmem:[%s2792_s1 + $0x100] sm:$0xff]  ;;  %v396_v22 = vld [vmem:[%s2793_s2 + $0x30] sm:$0xff] }
  0x19   :  { %276 = vmatpush.msra.mxu1 %v184_v46  ;;  %317 = vmatpush.msra.mxu2 %v200_v47  ;;  %v211_v4 = vld [vmem:[%s2792_s1 + $0x188] sm:$0xff]  ;;  %v210_v8 = vld [vmem:[%s2792_s1 + $0x180] sm:$0xff]  ;;  %v401_v23 = vld [vmem:[%s2793_s2 + $0x58] sm:$0xff] }
  0x1a   :  { %358 = vmatpush.msra.mxu3 %v216_v48  ;;  %236 = vmatpush.msra.mxu0 %v167_v49  ;;  %v399_v18 = vld [vmem:[%s2793_s2 + $0x48] sm:$0xff]  ;;  %v397_v24 = vld [vmem:[%s2793_s2 + $0x38] sm:$0xff]  ;;  %v398_v26 = vld [vmem:[%s2793_s2 + $0x40] sm:$0xff] }
  0x1b   :  { %277 = vmatpush.msra.mxu1 %v183_v50  ;;  %318 = vmatpush.msra.mxu2 %v199_v51  ;;  %v393_v25 = vld [vmem:[%s2793_s2 + $0x18] sm:$0xff]  ;;  %v394_v27 = vld [vmem:[%s2793_s2 + $0x20] sm:$0xff]  ;;  %v395_v32 = vld [vmem:[%s2793_s2 + $0x28] sm:$0xff] }
  0x1c   :  { %359 = vmatpush.msra.mxu3 %v215_v52  ;;  %237 = vmatpush.msra.mxu0 %v166_v53  ;;  %v390_v28 = vld [vmem:[%s2793_s2] sm:$0xff]  ;;  %v391_v33 = vld [vmem:[%s2793_s2 + $0x8] sm:$0xff]  ;;  %v392_v34 = vld [vmem:[%s2793_s2 + $0x10] sm:$0xff] }
  0x1d   :  { %278 = vmatpush.msra.mxu1 %v182_v54  ;;  %319 = vmatpush.msra.mxu2 %v198_v55 }
  0x1e   :  { %360 = vmatpush.msra.mxu3 %v214_v56  ;;  %238 = vmatpush.msra.mxu0 %v165_v57 }
  0x1f   :  { %279 = vmatpush.msra.mxu1 %v181_v58  ;;  %320 = vmatpush.msra.mxu2 %v197_v59 }
  0x20   :  { %361 = vmatpush.msra.mxu3 %v213_v60  ;;  %239 = vmatpush.msra.mxu0 %v164_v61 }
  0x21   :  { %280 = vmatpush.msra.mxu1 %v180_v62  ;;  %321 = vmatpush.msra.mxu2 %v196_v63 }
  0x22   :  { %362 = vmatpush.msra.mxu3 %v212_v0  ;;  %240 = vmatpush.msra.mxu0 %v163_v1 }
  0x23   :  { %281 = vmatpush.msra.mxu1 %v179_v2  ;;  %322 = vmatpush.msra.mxu2 %v195_v3  ;;  %v1678_v2 = vld [vmem:[%s2795_s3 + $0xa8] sm:$0xf]  ;;  %v1724_v3 = vld [vmem:[%s2795_s3 + $0xb0] sm:$0xf0] }
  0x24   :  { %363 = vmatpush.msra.mxu3 %v211_v4  ;;  %241 = vmatpush.msra.mxu0 %v162_v5  ;;  %v2206_v4 = vor.u32 %v1724_v3, %v1678_v2  ;;  %v1666_v5 = vld [vmem:[%s2795_s3 + $0x90] sm:$0xf]  ;;  %v1723_v2 = vld [vmem:[%s2795_s3 + $0xac] sm:$0xf]  ;;  %v1680_v3 = vld [vmem:[%s2795_s3 + $0xb4] sm:$0xf0] }
  0x25   :  { %282 = vmatpush.msra.mxu1 %v178_v6  ;;  %323 = vmatpush.msra.mxu2 %v194_v7  ;;  %v1721_v6 = vld [vmem:[%s2795_s3 + $0x98] sm:$0xf0] }
  0x26   :  { %364 = vmatpush.msra.mxu3 %v210_v8  ;;  %447 = vmatpush.msrb.mxu0 %v399_v18 }
  0x27   :  { %488 = vmatpush.msrb.mxu1 %v400_v19  ;;  %529 = vmatpush.msrb.mxu2 %v401_v23 }
  0x28   :  { %448 = vmatpush.msrb.mxu0 %v396_v22  ;;  %799 = vmatpush.bf16.msrb.mxu3 %v2206_v4 }
  0x29   :  { %489 = vmatpush.msrb.mxu1 %v397_v24  ;;  %530 = vmatpush.msrb.mxu2 %v398_v26 }
  0x2a   :  { %449 = vmatpush.msrb.mxu0 %v393_v25 }
  0x2b   :  { %490 = vmatpush.msrb.mxu1 %v394_v27  ;;  %531 = vmatpush.msrb.mxu2 %v395_v32 }
  0x2c   :  { %450 = vmatpush.msrb.mxu0 %v390_v28 }
  0x2d   :  { %491 = vmatpush.msrb.mxu1 %v391_v33  ;;  %532 = vmatpush.msrb.mxu2 %v392_v34 }
  0x5e   :  { %v56_v21 = vpop.permute.xlu2 %55 }
  0x66   :  { %v59_v29 = vpop.permute.xlu2 %58 }
  0x74   :  { %v44_v14 = vpop.permute.xlu0 %43  ;;  %v50_v17 = vpop.permute.xlu1 %49 }
  0x75   :  { %vm66_vm0 = vcmp.eq.s32.totalorder %v44_v14, %v2077_v10  ;;  %vm67_vm1 = vcmp.eq.s32.totalorder %v44_v14, %v2080_v11  ;;  %vm68_vm2 = vcmp.eq.s32.totalorder %v44_v14, %v2083_v12  ;;  %vm69_vm3 = vcmp.eq.s32.totalorder %v44_v14, %v2086_v13  ;;  %v1654_v14 = vld [vmem:[%s2795_s3 + $0x78] sm:$0xf] }
  0x76   :  { %1534 = vmatmul.msk.f32.vlgmr.msra.gmra.mxu0 %vm66_vm0, %v1815_v15  ;;  %1542 = vmatmul.msk.f32.vlgmr.msra.gmra.mxu1 %vm67_vm1, %v1815_v15  ;;  %vm74_vm8 = vcmp.eq.s32.totalorder %v50_v17, %v2077_v10  ;;  %vm75_vm9 = vcmp.eq.s32.totalorder %v50_v17, %v2080_v11  ;;  %vm76_vm10 = vcmp.eq.s32.totalorder %v50_v17, %v2083_v12 }
  0x77   :  { %1550 = vmatmul.msk.f32.vlgmr.msra.gmra.mxu2 %vm68_vm2, %v1815_v15  ;;  %1558 = vmatmul.msk.f32.vlgmr.msra.gmra.mxu3 %vm69_vm3, %v1815_v15  ;;  %vm77_vm11 = vcmp.eq.s32.totalorder %v50_v17, %v2086_v13  ;;  %vm82_vm0 = vcmp.eq.s32.totalorder %v56_v21, %v2077_v10  ;;  %vm83_vm1 = vcmp.eq.s32.totalorder %v56_v21, %v2080_v11 }
  0x78   :  { %vm84_vm2 = vcmp.eq.s32.totalorder %v56_v21, %v2083_v12  ;;  %vm85_vm3 = vcmp.eq.s32.totalorder %v56_v21, %v2086_v13  ;;  %893 = vmatpush.bf16.msra.mxu1 %v2206_v4 }
  0x7c   :  { %v47_v16 = vpop.permute.xlu0 %46  ;;  %v53_v20 = vpop.permute.xlu1 %52 }
  0x7d   :  { %vm70_vm4 = vcmp.eq.s32.totalorder %v47_v16, %v2077_v10  ;;  %vm71_vm5 = vcmp.eq.s32.totalorder %v47_v16, %v2080_v11  ;;  %vm72_vm6 = vcmp.eq.s32.totalorder %v47_v16, %v2083_v12  ;;  %vm73_vm7 = vcmp.eq.s32.totalorder %v47_v16, %v2086_v13 }
  0x7e   :  { %1535 = vmatmul.msk.f32.gmra.mxu0 %vm70_vm4, %v1815_v15  ;;  %1543 = vmatmul.msk.f32.gmra.mxu1 %vm71_vm5, %v1815_v15  ;;  %vm78_vm12 = vcmp.eq.s32.totalorder %v53_v20, %v2077_v10  ;;  %vm79_vm13 = vcmp.eq.s32.totalorder %v53_v20, %v2080_v11  ;;  %vm80_vm14 = vcmp.eq.s32.totalorder %v53_v20, %v2083_v12 }
  0x7f   :  { %1551 = vmatmul.msk.f32.gmra.mxu2 %vm72_vm6, %v1815_v15  ;;  %1559 = vmatmul.msk.f32.gmra.mxu3 %vm73_vm7, %v1815_v15  ;;  %vm81_vm15 = vcmp.eq.s32.totalorder %v53_v20, %v2086_v13  ;;  %vm86_vm4 = vcmp.eq.s32.totalorder %v59_v29, %v2077_v10  ;;  %vm87_vm5 = vcmp.eq.s32.totalorder %v59_v29, %v2080_v11 }
  0x80   :  { %vm88_vm6 = vcmp.eq.s32.totalorder %v59_v29, %v2083_v12  ;;  %vm89_vm7 = vcmp.eq.s32.totalorder %v59_v29, %v2086_v13 }
  0x84   :  { %v62_v30 = vpop.permute.xlu0 %61  ;;  %v65_v31 = vpop.permute.xlu1 %64 }
  0x86   :  { %1536 = vmatmul.msk.f32.gmra.mxu0 %vm74_vm8, %v1815_v15  ;;  %1544 = vmatmul.msk.f32.gmra.mxu1 %vm75_vm9, %v1815_v15  ;;  %vm90_vm8 = vcmp.eq.s32.totalorder %v62_v30, %v2077_v10  ;;  %vm91_vm9 = vcmp.eq.s32.totalorder %v62_v30, %v2080_v11 }
  0x87   :  { %1552 = vmatmul.msk.f32.gmra.mxu2 %vm76_vm10, %v1815_v15  ;;  %1560 = vmatmul.msk.f32.gmra.mxu3 %vm77_vm11, %v1815_v15  ;;  %vm92_vm10 = vcmp.eq.s32.totalorder %v62_v30, %v2083_v12  ;;  %vm93_vm11 = vcmp.eq.s32.totalorder %v62_v30, %v2086_v13 }
  0x8e   :  { %1537 = vmatmul.msk.f32.gmra.mxu0 %vm78_vm12, %v1815_v15  ;;  %1545 = vmatmul.msk.f32.gmra.mxu1 %vm79_vm13, %v1815_v15  ;;  %vm94_vm12 = vcmp.eq.s32.totalorder %v65_v31, %v2077_v10  ;;  %vm95_vm13 = vcmp.eq.s32.totalorder %v65_v31, %v2080_v11 }
  0x8f   :  { %1553 = vmatmul.msk.f32.gmra.mxu2 %vm80_vm14, %v1815_v15  ;;  %1561 = vmatmul.msk.f32.gmra.mxu3 %vm81_vm15, %v1815_v15  ;;  %vm96_vm14 = vcmp.eq.s32.totalorder %v65_v31, %v2083_v12  ;;  %vm97_vm15 = vcmp.eq.s32.totalorder %v65_v31, %v2086_v13  ;;  %v2216_v12 = vor.u32 %v1721_v6, %v1666_v5  ;;  %v1638_v5 = vld [vmem:[%s2795_s3 + $0x50] sm:$0xf] }
  0x90   :  { %v2346_v6 = vor.u32 %v1723_v2, %v1680_v3 }
  0x91   :  { %800 = vmatpush.bf16.msrb.mxu3 %v2216_v12  ;;  %894 = vmatpush.bf16.msra.mxu1 %v2216_v12 }
  0x92   :  { %906 = vmatpush.bf16.msra.mxu2 %v2346_v6 }
  0x96   :  { %1538 = vmatmul.msk.f32.gmra.mxu0 %vm82_vm0, %v1815_v15  ;;  %1546 = vmatmul.msk.f32.gmra.mxu1 %vm83_vm1, %v1815_v15  ;;  %vm410_vm0 = vcmask 261120  }
  0x97   :  { %1554 = vmatmul.msk.f32.gmra.mxu2 %vm84_vm2, %v1815_v15  ;;  %1562 = vmatmul.msk.f32.gmra.mxu3 %vm85_vm3, %v1815_v15 }
  0x9e   :  { %1539 = vmatmul.msk.f32.gmra.mxu0 %vm86_vm4, %v1815_v15  ;;  %1547 = vmatmul.msk.f32.gmra.mxu1 %vm87_vm5, %v1815_v15 }
  0x9f   :  { %1555 = vmatmul.msk.f32.gmra.mxu2 %vm88_vm6, %v1815_v15  ;;  %1563 = vmatmul.msk.f32.gmra.mxu3 %vm89_vm7, %v1815_v15 }
  0xa6   :  { %1540 = vmatmul.msk.f32.gmra.mxu0 %vm90_vm8, %v1815_v15  ;;  %1548 = vmatmul.msk.f32.gmra.mxu1 %vm91_vm9, %v1815_v15 }
  0xa7   :  { %1556 = vmatmul.msk.f32.gmra.mxu2 %vm92_vm10, %v1815_v15  ;;  %1564 = vmatmul.msk.f32.gmra.mxu3 %vm93_vm11, %v1815_v15 }
  0xae   :  { %1541 = vmatmul.msk.f32.gmra.mxu0 %vm94_vm12, %v1815_v15  ;;  %1549 = vmatmul.msk.f32.gmra.mxu1 %vm95_vm13, %v1815_v15 }
  0xaf   :  { %1557 = vmatmul.msk.f32.gmra.mxu2 %vm96_vm14, %v1815_v15  ;;  %1565 = vmatmul.msk.f32.gmra.mxu3 %vm97_vm15, %v1815_v15  ;;  %v1718_v15 = vld [vmem:[%s2795_s3 + $0x80] sm:$0xf0] }
  0xb0   :  { %v2228_v17 = vor.u32 %v1718_v15, %v1654_v14  ;;  %v1720_v14 = vld [vmem:[%s2795_s3 + $0x94] sm:$0xf]  ;;  %v1668_v15 = vld [vmem:[%s2795_s3 + $0x9c] sm:$0xf0] }
  0xb2   :  { %801 = vmatpush.bf16.msrb.mxu3 %v2228_v17  ;;  %895 = vmatpush.bf16.msra.mxu1 %v2228_v17 }
  0xf3   :  { %v243_v35 = vpop.f32.mrf.mxu0  ;;  %v284_v36 = vpop.f32.mrf.mxu1 }
  0xf4   :  { %v285_v37 = vadd.f32 %v284_v36, %v243_v35  ;;  %v1642_v36 = vld [vmem:[%s2795_s3 + $0x60] sm:$0xf] }
  0xfa   :  { %v325_v38 = vpop.f32.mrf.mxu2  ;;  %v366_v39 = vpop.f32.mrf.mxu3 }
  0xfb   :  { %v326_v40 = vadd.f32 %v325_v38, %v285_v37  ;;  %v246_v41 = vpop.f32.mrf.mxu0  ;;  %v287_v42 = vpop.f32.mrf.mxu1  ;;  %v1715_v37 = vld [vmem:[%s2795_s3 + $0x68] sm:$0xf0] }
  0xfc   :  { %v288_v44 = vadd.f32 %v287_v42, %v246_v41  ;;  %v2248_v38 = vor.u32 %v1715_v37, %v1642_v36  ;;  %v1630_v42 = vld [vmem:[%s2795_s3 + $0x48] sm:$0xf]  ;;  %v1704_v37 = vld [vmem:[%s2795_s3 + $0x10] sm:$0xf0] }
  0xfd   :  { %v367_v43 = vadd.f32 %v366_v39, %v326_v40  ;;  %v1686_v39 = vld [vmem:[%s2795_s3 + $0xb0] sm:$0xf]  ;;  %v1725_v40 = vld [vmem:[%s2795_s3 + $0xb8] sm:$0xf0] }
  0xfe   :  { %v2256_v41 = vor.u32 %v1725_v40, %v1686_v39  ;;  %802 = vmatpush.bf16.msrb.mxu3 %v2248_v38  ;;  %896 = vmatpush.bf16.msra.mxu1 %v2248_v38 }
  0xff   :  { %1566 = vmatmul.msk.f32.vlgmr.msrb.gmra.mxu0 %vm410_vm0, %v367_v43  ;;  %1574 = vmatmul.msk.f32.vlgmr.msrb.gmra.mxu1 %vm410_vm0, %v367_v43 }
 0x100   :  { %1582 = vmatmul.msk.f32.vlgmr.msrb.gmra.mxu2 %vm410_vm0, %v367_v43  ;;  %v1712_v43 = vld [vmem:[%s2795_s3 + $0x50] sm:$0xf0]  ;;  %825 = vmatpush.bf16.msra.mxu0 %v2256_v41 }
 0x102   :  { %v328_v45 = vpop.f32.mrf.mxu2  ;;  %v369_v46 = vpop.f32.mrf.mxu3 }
 0x103   :  { %v329_v47 = vadd.f32 %v328_v45, %v288_v44  ;;  %v249_v48 = vpop.f32.mrf.mxu0  ;;  %v290_v49 = vpop.f32.mrf.mxu1  ;;  %v2267_v44 = vor.u32 %v1712_v43, %v1630_v42  ;;  %v1674_v45 = vld [vmem:[%s2795_s3 + $0x98] sm:$0xf] }
 0x104   :  { %v291_v51 = vadd.f32 %v290_v49, %v249_v48  ;;  %v1618_v48 = vld [vmem:[%s2795_s3 + $0x30] sm:$0xf]  ;;  %v1709_v49 = vld [vmem:[%s2795_s3 + $0x38] sm:$0xf0] }
 0x105   :  { %v370_v50 = vadd.f32 %v369_v46, %v329_v47  ;;  %v1722_v46 = vld [vmem:[%s2795_s3 + $0xa0] sm:$0xf0]  ;;  %803 = vmatpush.bf16.msrb.mxu3 %v2267_v44  ;;  %897 = vmatpush.bf16.msra.mxu1 %v2267_v44 }
 0x106   :  { %v2275_v47 = vor.u32 %v1722_v46, %v1674_v45  ;;  %v1711_v46 = vld [vmem:[%s2795_s3 + $0x4c] sm:$0xf] }
 0x107   :  { %1567 = vmatmul.msk.f32.gmra.mxu0 %vm410_vm0, %v370_v50  ;;  %1575 = vmatmul.msk.f32.gmra.mxu1 %vm410_vm0, %v370_v50 }
 0x108   :  { %1583 = vmatmul.msk.f32.gmra.mxu2 %vm410_vm0, %v370_v50  ;;  %826 = vmatpush.bf16.msra.mxu0 %v2275_v47  ;;  %v2286_v50 = vor.u32 %v1709_v49, %v1618_v48  ;;  %v1632_v48 = vld [vmem:[%s2795_s3 + $0x54] sm:$0xf0] }
 0x10a   :  { %v331_v52 = vpop.f32.mrf.mxu2  ;;  %v372_v53 = vpop.f32.mrf.mxu3  ;;  %804 = vmatpush.bf16.msrb.mxu3 %v2286_v50  ;;  %898 = vmatpush.bf16.msra.mxu1 %v2286_v50 }
 0x10b   :  { %v332_v54 = vadd.f32 %v331_v52, %v291_v51  ;;  %v252_v55 = vpop.f32.mrf.mxu0  ;;  %v293_v56 = vpop.f32.mrf.mxu1  ;;  %v1662_v51 = vld [vmem:[%s2795_s3 + $0x80] sm:$0xf]  ;;  %v1719_v52 = vld [vmem:[%s2795_s3 + $0x88] sm:$0xf0] }
 0x10c   :  { %v294_v58 = vadd.f32 %v293_v56, %v252_v55  ;;  %v1706_v55 = vld [vmem:[%s2795_s3 + $0x20] sm:$0xf0]  ;;  %v2308_v56 = vld [vmem:[%s2796_s4] sm:$0x7] }
 0x10d   :  { %v373_v57 = vadd.f32 %v372_v53, %v332_v54  ;;  %v2294_v53 = vor.u32 %v1719_v52, %v1662_v51  ;;  %v1606_v54 = vld [vmem:[%s2795_s3 + $0x18] sm:$0xf] }
 0x10f   :  { %1568 = vmatmul.msk.f32.gmra.mxu0 %vm410_vm0, %v373_v57  ;;  %1576 = vmatmul.msk.f32.gmra.mxu1 %vm410_vm0, %v373_v57 }
 0x110   :  { %1584 = vmatmul.msk.f32.gmra.mxu2 %vm410_vm0, %v373_v57  ;;  %827 = vmatpush.bf16.msra.mxu0 %v2294_v53  ;;  %v2310_v57 = vor.u32 %v1706_v55, %v1606_v54  ;;  %v2442_v54 = vor.u32 %v1711_v46, %v1632_v48 }
 0x112   :  { %v334_v59 = vpop.f32.mrf.mxu2  ;;  %v375_v60 = vpop.f32.mrf.mxu3  ;;  %805 = vmatpush.bf16.msrb.mxu3 %v2310_v57  ;;  %899 = vmatpush.bf16.msra.mxu1 %v2310_v57 }
 0x113   :  { %v335_v61 = vadd.f32 %v334_v59, %v294_v58  ;;  %v255_v62 = vpop.f32.mrf.mxu0  ;;  %v296_v63 = vpop.f32.mrf.mxu1  ;;  %v1650_v58 = vld [vmem:[%s2795_s3 + $0x68] sm:$0xf]  ;;  %v1716_v59 = vld [vmem:[%s2795_s3 + $0x70] sm:$0xf0] }
 0x114   :  { %v297_v1 = vadd.f32 %v296_v63, %v255_v62  ;;  %v2326_v62 = vperm.slane %v2308_v56, 1  ;;  %v1594_v63 = vld [vmem:[%s2795_s3] sm:$0xf] }
 0x115   :  { %v376_v0 = vadd.f32 %v375_v60, %v335_v61  ;;  %v2318_v60 = vor.u32 %v1716_v59, %v1650_v58  ;;  %v2323_v61 = vperm.slane %v2308_v56, 0  ;;  %v1708_v58 = vld [vmem:[%s2795_s3 + $0x34] sm:$0xf]  ;;  %v1620_v59 = vld [vmem:[%s2795_s3 + $0x3c] sm:$0xf0] }
 0x117   :  { %1569 = vmatmul.msk.f32.gmra.mxu0 %vm410_vm0, %v376_v0  ;;  %1577 = vmatmul.msk.f32.gmra.mxu1 %vm410_vm0, %v376_v0  ;;  %2801 = vst [vmem:[#allocation3_spill] sm:$0xff] %v2323_v61 }
 0x118   :  { %1585 = vmatmul.msk.f32.gmra.mxu2 %vm410_vm0, %v376_v0  ;;  %828 = vmatpush.bf16.msra.mxu0 %v2318_v60  ;;  %v1703_v0 = vld [vmem:[%s2795_s3 + $0x8] sm:$0xf0] }
 0x11a   :  { %v337_v7 = vpop.f32.mrf.mxu2  ;;  %v378_v8 = vpop.f32.mrf.mxu3 }
 0x11b   :  { %v338_v9 = vadd.f32 %v337_v7, %v297_v1  ;;  %v258_v10 = vpop.f32.mrf.mxu0  ;;  %v299_v11 = vpop.f32.mrf.mxu1  ;;  %v2335_v1 = vor.u32 %v1703_v0, %v1594_v63  ;;  %v1713_v7 = vld [vmem:[%s2795_s3 + $0x58] sm:$0xf0]  ;;  %v2454_v63 = vor.u32 %v1708_v58, %v1620_v59 }
 0x11c   :  { %v300_v16 = vadd.f32 %v299_v11, %v258_v10 }
 0x11d   :  { %v379_v13 = vadd.f32 %v378_v8, %v338_v9  ;;  %806 = vmatpush.bf16.msrb.mxu3 %v2335_v1  ;;  %v2352_v8 = vor.u32 %v1713_v7, %v1638_v5  ;;  %900 = vmatpush.bf16.msra.mxu1 %v2335_v1  ;;  %v1705_v5 = vld [vmem:[%s2795_s3 + $0x1c] sm:$0xf]  ;;  %v1608_v7 = vld [vmem:[%s2795_s3 + $0x24] sm:$0xf0] }
 0x11f   :  { %1570 = vmatmul.msk.f32.gmra.mxu0 %vm410_vm0, %v379_v13  ;;  %1578 = vmatmul.msk.f32.gmra.mxu1 %vm410_vm0, %v379_v13 }
 0x120   :  { %1586 = vmatmul.msk.f32.gmra.mxu2 %vm410_vm0, %v379_v13  ;;  %829 = vmatpush.bf16.msra.mxu0 %v2352_v8 }
 0x121   :  { %812 = vmatpush.bf16.msra.mxu3 %v2346_v6  ;;  %1000 = vmatpush.bf16.msrb.mxu1 %v2346_v6 }
 0x122   :  { %v340_v18 = vpop.f32.mrf.mxu2  ;;  %v381_v19 = vpop.f32.mrf.mxu3 }
 0x123   :  { %v341_v20 = vadd.f32 %v340_v18, %v300_v16  ;;  %v261_v21 = vpop.f32.mrf.mxu0  ;;  %v302_v22 = vpop.f32.mrf.mxu1  ;;  %v1626_v16 = vld [vmem:[%s2795_s3 + $0x38] sm:$0xf]  ;;  %v2370_v18 = vor.u32 %v1720_v14, %v1668_v15 }
 0x124   :  { %v303_v24 = vadd.f32 %v302_v22, %v261_v21 }
 0x125   :  { %v382_v23 = vadd.f32 %v381_v19, %v341_v20  ;;  %v1710_v19 = vld [vmem:[%s2795_s3 + $0x40] sm:$0xf0]  ;;  %813 = vmatpush.bf16.msra.mxu3 %v2370_v18  ;;  %907 = vmatpush.bf16.msra.mxu2 %v2370_v18 }
 0x126   :  { %v2375_v22 = vor.u32 %v1710_v19, %v1626_v16  ;;  %1001 = vmatpush.bf16.msrb.mxu1 %v2370_v18 }
 0x127   :  { %1571 = vmatmul.msk.f32.gmra.mxu0 %vm410_vm0, %v382_v23  ;;  %1579 = vmatmul.msk.f32.gmra.mxu1 %vm410_vm0, %v382_v23 }
 0x128   :  { %1587 = vmatmul.msk.f32.gmra.mxu2 %vm410_vm0, %v382_v23  ;;  %830 = vmatpush.bf16.msra.mxu0 %v2375_v22  ;;  %v1717_v23 = vld [vmem:[%s2795_s3 + $0x7c] sm:$0xf] }
 0x12a   :  { %v343_v25 = vpop.f32.mrf.mxu2  ;;  %v384_v26 = vpop.f32.mrf.mxu3 }
 0x12b   :  { %v344_v27 = vadd.f32 %v343_v25, %v303_v24  ;;  %v264_v28 = vpop.f32.mrf.mxu0  ;;  %v305_v29 = vpop.f32.mrf.mxu1  ;;  %v1656_v24 = vld [vmem:[%s2795_s3 + $0x84] sm:$0xf0]  ;;  %v1614_v25 = vld [vmem:[%s2795_s3 + $0x20] sm:$0xf] }
 0x12c   :  { %v306_v31 = vadd.f32 %v305_v29, %v264_v28 }
 0x12d   :  { %v385_v30 = vadd.f32 %v384_v26, %v344_v27  ;;  %v2390_v26 = vor.u32 %v1717_v23, %v1656_v24  ;;  %v1707_v27 = vld [vmem:[%s2795_s3 + $0x28] sm:$0xf0]  ;;  %v1702_v23 = vld [vmem:[%s2795_s3 + $0x4] sm:$0xf]  ;;  %v1596_v24 = vld [vmem:[%s2795_s3 + $0xc] sm:$0xf0] }
 0x12e   :  { %v2397_v29 = vor.u32 %v1707_v27, %v1614_v25 }
 0x12f   :  { %1572 = vmatmul.msk.f32.gmra.mxu0 %vm410_vm0, %v385_v30  ;;  %1580 = vmatmul.msk.f32.gmra.mxu1 %vm410_vm0, %v385_v30 }
 0x130   :  { %1588 = vmatmul.msk.f32.gmra.mxu2 %vm410_vm0, %v385_v30  ;;  %814 = vmatpush.bf16.msra.mxu3 %v2390_v26 }
 0x131   :  { %908 = vmatpush.bf16.msra.mxu2 %v2390_v26  ;;  %831 = vmatpush.bf16.msra.mxu0 %v2397_v29 }
 0x132   :  { %v346_v32 = vpop.f32.mrf.mxu2  ;;  %v387_v33 = vpop.f32.mrf.mxu3  ;;  %1002 = vmatpush.bf16.msrb.mxu1 %v2390_v26 }
 0x133   :  { %v347_v34 = vadd.f32 %v346_v32, %v306_v31 }
 0x135   :  { %v388_v35 = vadd.f32 %v387_v33, %v347_v34  ;;  %v1714_v33 = vld [vmem:[%s2795_s3 + $0x64] sm:$0xf]  ;;  %v1644_v34 = vld [vmem:[%s2795_s3 + $0x6c] sm:$0xf0] }
 0x136   :  { %v2417_v36 = vor.u32 %v1714_v33, %v1644_v34  ;;  %v2495_v34 = vor.u32 %v1702_v23, %v1596_v24 }
 0x137   :  { %1573 = vmatmul.msk.f32.gmra.mxu0 %vm410_vm0, %v388_v35  ;;  %1581 = vmatmul.msk.f32.gmra.mxu1 %vm410_vm0, %v388_v35 }
 0x138   :  { %1589 = vmatmul.msk.f32.gmra.mxu2 %vm410_vm0, %v388_v35  ;;  %v1602_v35 = vld [vmem:[%s2795_s3 + $0x8] sm:$0xf]  ;;  %815 = vmatpush.bf16.msra.mxu3 %v2417_v36 }
 0x139   :  { %v2422_v40 = vor.u32 %v1704_v37, %v1602_v35  ;;  %909 = vmatpush.bf16.msra.mxu2 %v2417_v36  ;;  %1003 = vmatpush.bf16.msrb.mxu1 %v2417_v36  ;;  %v2501_v35 = vld [vmem:[%s2794_s5] ss:$0 sm:$0xff] }
 0x13b   :  { %832 = vmatpush.bf16.msra.mxu0 %v2422_v40 }
 0x13c   :  { %816 = vmatpush.bf16.msra.mxu3 %v2442_v54 }
 0x13d   :  { %910 = vmatpush.bf16.msra.mxu2 %v2442_v54  ;;  %1004 = vmatpush.bf16.msrb.mxu1 %v2442_v54 }
 0x13f   :  { %987 = vmatpush.bf16.msrb.mxu0 %v2206_v4 }
 0x140   :  { %817 = vmatpush.bf16.msra.mxu3 %v2454_v63 }
 0x141   :  { %911 = vmatpush.bf16.msra.mxu2 %v2454_v63  ;;  %1005 = vmatpush.bf16.msrb.mxu1 %v2454_v63 }
 0x143   :  { %988 = vmatpush.bf16.msrb.mxu0 %v2216_v12 }
 0x147   :  { %989 = vmatpush.bf16.msrb.mxu0 %v2228_v17 }
 0x14b   :  { %990 = vmatpush.bf16.msrb.mxu0 %v2248_v38 }
 0x14f   :  { %991 = vmatpush.bf16.msrb.mxu0 %v2267_v44 }
 0x153   :  { %992 = vmatpush.bf16.msrb.mxu0 %v2286_v50 }
 0x157   :  { %993 = vmatpush.bf16.msrb.mxu0 %v2310_v57 }
 0x15b   :  { %994 = vmatpush.bf16.msrb.mxu0 %v2335_v1 }
 0x17c   :  { %v452_v9 = vpop.f32.mrf.mxu0  ;;  %v493_v10 = vpop.f32.mrf.mxu1 }
 0x17d   :  { %v453_v11 = vadd.f32 %v452_v9, %v2323_v61  ;;  %v494_v13 = vadd.f32 %v493_v10, %v2326_v62  ;;  %v2470_v10 = vperm.slane %v2308_v56, 2 }
 0x17f   :  { %v1590_v20 = vmul.f32 -1.442695, %v453_v11  ;;  %v1591_v21 = vmul.f32 -1.442695, %v494_v13  ;;  %v2473_v11 = vor.u32 %v1705_v5, %v1608_v7 }
 0x181   :  { %1733 = vpow2.f32 %v1590_v20  ;;  %818 = vmatpush.bf16.msra.mxu3 %v2473_v11  ;;  %912 = vmatpush.bf16.msra.mxu2 %v2473_v11 }
 0x182   :  { %1735 = vpow2.f32 %v1591_v21  ;;  %1006 = vmatpush.bf16.msrb.mxu1 %v2473_v11 }
 0x183   :  { %v2395_v28 = vpop.f32.mrf.mxu2 }
 0x184   :  { %v455_v30 = vpop.f32.mrf.mxu0  ;;  %v2399_v31 = vpop.f32.mrf.mxu1 }
 0x185   :  { %v2404_v32 = vadd.f32 %v455_v30, %v2323_v61  ;;  %819 = vmatpush.bf16.msra.mxu3 %v2495_v34  ;;  %913 = vmatpush.bf16.msra.mxu2 %v2495_v34 }
 0x186   :  { %1007 = vmatpush.bf16.msrb.mxu1 %v2495_v34 }
 0x187   :  { %v1734_v39 = vpop.eup %1733 }
 0x188   :  { %v1736_v42 = vpop.eup %1735  ;;  %v624_v43 = vadd.f32 1.0, %v1734_v39 }
 0x189   :  { %v2426_v45 = vadd.f32 1.0, %v1736_v42  ;;  %1013 = vmatpush.bf16.msrb.mxu2 %v2256_v41 }
 0x18a   :  { %1737 = vrcp.f32 %v624_v43  ;;  %v634_v14 = vand.u32 2147483647, %v624_v43  ;;  %v636_v19 = vand.u32 2147483648, %v624_v43  ;;  %vm630_vm2 = vweird.f32 %v624_v43 }
 0x18b   :  { %1739 = vrcp.f32 %v2426_v45  ;;  %v2438_v49 = vpop.f32.mrf.mxu2  ;;  %v655_v59 = vand.u32 2147483648, %v2426_v45  ;;  %vm649_vm6 = vweird.f32 %v2426_v45  ;;  %v653_v7 = vand.u32 2147483647, %v2426_v45 }
 0x18c   :  { %v458_v51 = vpop.f32.mrf.mxu0  ;;  %v2440_v52 = vpop.f32.mrf.mxu1  ;;  %v637_v39 = vor.u32 1.1754944e-38, %v636_v19  ;;  %vm635_vm4 = vcmp.eq.f32.partialorder %v634_v14, 8.507059e+37 }
 0x18d   :  { %v2445_v55 = vadd.f32 %v458_v51, %v2323_v61  ;;  %1014 = vmatpush.bf16.msrb.mxu2 %v2275_v47  ;;  %vm654_vm8 = vcmp.eq.f32.partialorder %v653_v7, 8.507059e+37 }
 0x190   :  { %v1738_v0 = vpop.eup %1737 }
 0x191   :  { %v2459_v2 = vpop.eup %1739  ;;  %v626_v3 = vmul.f32 %v1738_v0, %v624_v43  ;;  %vm631_vm1 = vweird.f32 %v1738_v0  ;;  %v535_v43 = vadd.f32 %v2395_v28, %v2470_v10  ;;  %1015 = vmatpush.bf16.msrb.mxu2 %v2294_v53 }
 0x192   :  { %v645_v9 = vmul.f32 %v2459_v2, %v2426_v45  ;;  %vm632_vm3 = vmor %vm630_vm2, %vm631_vm1  ;;  %vm650_vm5 = vweird.f32 %v2459_v2 }
 0x193   :  { %v627_v13 = vsub.f32 1.0, %v626_v3  ;;  %v540_v15 = vpop.f32.mrf.mxu2  ;;  %vm651_vm7 = vmor %vm649_vm6, %vm650_vm5 }
 0x194   :  { %v646_v16 = vsub.f32 1.0, %v645_v9  ;;  %v2479_v20 = vadd.f32 %v540_v15, %v2470_v10  ;;  %v461_v56 = vpop.f32.mrf.mxu0  ;;  %v502_v21 = vpop.f32.mrf.mxu1  ;;  %v656_v15 = vor.u32 1.1754944e-38, %v655_v59 }
 0x195   :  { %v628_v25 = vmul.f32 %v1738_v0, %v627_v13  ;;  %v2488_v27 = vadd.f32 %v461_v56, %v2323_v61  ;;  %v2491_v30 = vadd.f32 %v502_v21, %v2326_v62  ;;  %1016 = vmatpush.bf16.msrb.mxu2 %v2318_v60 }
 0x196   :  { %v647_v33 = vmul.f32 %v2459_v2, %v646_v16 }
 0x197   :  { %v629_v37 = vadd.f32 %v1738_v0, %v628_v25 }
 0x198   :  { %v648_v48 = vadd.f32 %v2459_v2, %v647_v33 }
 0x199   :  { %v633_v42 = vsel %vm632_vm3, %v1738_v0, %v629_v37  ;;  %1017 = vmatpush.bf16.msrb.mxu2 %v2352_v8 }
 0x19a   :  { %v638_v46 = vsel %vm635_vm4, %v637_v39, %v633_v42  ;;  %v652_v14 = vsel %vm651_vm7, %v2459_v2, %v648_v48 }
 0x19b   :  { %v659_v51 = vmul.f32 %v2501_v35, %v638_v46  ;;  %v543_v58 = vpop.f32.mrf.mxu2  ;;  %v657_v45 = vsel %vm654_vm8, %v656_v15, %v652_v14 }
 0x19c   :  { %v2516_v0 = vadd.f32 %v543_v58, %v2470_v10  ;;  %v464_v3 = vpop.f32.mrf.mxu0  ;;  %v505_v5 = vpop.f32.mrf.mxu1  ;;  %v662_v23 = vsub.f32 1.0, %v657_v45 }
 0x19d   :  { %v660_v28 = vadd.f32 %v659_v51, %v535_v43  ;;  %v2522_v9 = vadd.f32 %v464_v3, %v2323_v61  ;;  %v2525_v13 = vadd.f32 %v505_v5, %v2326_v62  ;;  %1018 = vmatpush.bf16.msrb.mxu2 %v2375_v22 }
 0x19f   :  { %1741 = vtanh.f32 %v660_v28 }
 0x1a1   :  { %1019 = vmatpush.bf16.msrb.mxu2 %v2397_v29 }
 0x1a3   :  { %v546_v16 = vpop.f32.mrf.mxu2 }
 0x1a4   :  { %v2535_v19 = vadd.f32 %v546_v16, %v2470_v10  ;;  %v467_v56 = vpop.f32.mrf.mxu0  ;;  %v508_v21 = vpop.f32.mrf.mxu1 }
 0x1a5   :  { %v1742_v2 = vpop.eup %1741  ;;  %v2538_v24 = vadd.f32 %v467_v56, %v2323_v61  ;;  %v2541_v25 = vadd.f32 %v508_v21, %v2326_v62  ;;  %1020 = vmatpush.bf16.msrb.mxu2 %v2422_v40  ;;  %v497_v21 = vadd.f32 %v2399_v31, %v2326_v62 }
 0x1a6   :  { %v2543_v33 = vmul.f32 %v1742_v2, %v662_v23 }
 0x1a8   :  { %v670_v37 = vpack.c.bf16 %v2543_v33, %v2543_v33 }
 0x1aa   :  { %807 = vmatmul.bf16.vlgmr.msrb.gmra.mxu3 %v670_v37  ;;  %833 = vmatmul.bf16.vlgmr.msra.gmra.mxu0 %v670_v37 }
 0x1ab   :  { %v549_v39 = vpop.f32.mrf.mxu2  ;;  %919 = vmatpush.bf16.msrb.mxu3 %v2256_v41  ;;  %1094 = vmatpush.bf16.msra.mxu0 %v2346_v6 }
 0x1ac   :  { %v2552_v42 = vadd.f32 %v549_v39, %v2470_v10  ;;  %v470_v46 = vpop.f32.mrf.mxu0  ;;  %v511_v48 = vpop.f32.mrf.mxu1 }
 0x1ad   :  { %v2556_v43 = vadd.f32 %v470_v46, %v2323_v61  ;;  %v2559_v51 = vadd.f32 %v511_v48, %v2326_v62 }
 0x1af   :  { %920 = vmatpush.bf16.msrb.mxu3 %v2275_v47  ;;  %1095 = vmatpush.bf16.msra.mxu0 %v2370_v18 }
 0x1b3   :  { %v552_v58 = vpop.f32.mrf.mxu2  ;;  %921 = vmatpush.bf16.msrb.mxu3 %v2294_v53  ;;  %1096 = vmatpush.bf16.msra.mxu0 %v2390_v26 }
 0x1b4   :  { %v2567_v59 = vadd.f32 %v552_v58, %v2470_v10  ;;  %v2589_v3 = vpop.f32.mrf.mxu0 }
 0x1b5   :  { %2802 = vst [vmem:[#allocation4_spill] sm:$0xff] %v2589_v3 }
 0x1b7   :  { %922 = vmatpush.bf16.msrb.mxu3 %v2318_v60  ;;  %1097 = vmatpush.bf16.msra.mxu0 %v2417_v36 }
 0x1ba   :  { %820 = vmatmul.bf16.vlgmr.msra.gmra.mxu3 %v670_v37 }
 0x1bb   :  { %923 = vmatpush.bf16.msrb.mxu3 %v2352_v8  ;;  %1098 = vmatpush.bf16.msra.mxu0 %v2442_v54 }
 0x1bf   :  { %924 = vmatpush.bf16.msrb.mxu3 %v2375_v22  ;;  %1099 = vmatpush.bf16.msra.mxu0 %v2454_v63 }
 0x1c3   :  { %925 = vmatpush.bf16.msrb.mxu3 %v2397_v29  ;;  %1100 = vmatpush.bf16.msra.mxu0 %v2473_v11 }
 0x1c7   :  { %926 = vmatpush.bf16.msrb.mxu3 %v2422_v40  ;;  %1101 = vmatpush.bf16.msra.mxu0 %v2495_v34 }
 0x1cb   :  { %1081 = vmatpush.bf16.msra.mxu3 %v2206_v4 }
 0x1cf   :  { %1082 = vmatpush.bf16.msra.mxu3 %v2216_v12 }
 0x1d3   :  { %1083 = vmatpush.bf16.msra.mxu3 %v2228_v17 }
 0x1d7   :  { %1084 = vmatpush.bf16.msra.mxu3 %v2248_v38 }
 0x1db   :  { %1085 = vmatpush.bf16.msra.mxu3 %v2267_v44 }
 0x1df   :  { %1086 = vmatpush.bf16.msra.mxu3 %v2286_v50 }
 0x1e3   :  { %1087 = vmatpush.bf16.msra.mxu3 %v2310_v57 }
 0x1e7   :  { %1088 = vmatpush.bf16.msra.mxu3 %v2335_v1 }
 0x227   :  { %v834_v5 = vpop.f32.mrf.mxu0 }
 0x228   :  { %v878_v31 = vadd.f32 %v2501_v35, %v834_v5 }
 0x22d   :  { %v808_v7 = vpop.f32.mrf.mxu3 }
 0x22e   :  { %v838_v28 = vadd.f32 %v808_v7, %v2404_v32 }
 0x22f   :  { %v836_v14 = vpop.f32.mrf.mxu0 }
 0x230   :  { %v1688_v15 = vmul.f32 -1.442695, %v838_v28 }
 0x232   :  { %1743 = vpow2.f32 %v1688_v15 }
 0x235   :  { %v810_v45 = vpop.f32.mrf.mxu3 }
 0x238   :  { %v1744_v16 = vpop.eup %1743 }
 0x239   :  { %v842_v56 = vadd.f32 1.0, %v1744_v16 }
 0x23b   :  { %1745 = vrcp.f32 %v842_v56  ;;  %v854_v58 = vand.u32 2147483648, %v842_v56  ;;  %v852_v7 = vand.u32 2147483647, %v842_v56  ;;  %vm848_vm10 = vweird.f32 %v842_v56 }
 0x23d   :  { %v821_v23 = vpop.f32.mrf.mxu3  ;;  %v855_v15 = vor.u32 1.1754944e-38, %v854_v58  ;;  %vm853_vm12 = vcmp.eq.f32.partialorder %v852_v7, 8.507059e+37 }
 0x23e   :  { %v858_v2 = vadd.f32 %v821_v23, %v497_v21  ;;  %v538_v23 = vadd.f32 %v2438_v49, %v2470_v10 }
 0x240   :  { %v1689_v37 = vmul.f32 -1.442695, %v858_v2 }
 0x241   :  { %v1746_v39 = vpop.eup %1745 }
 0x242   :  { %v844_v46 = vmul.f32 %v1746_v39, %v842_v56  ;;  %1747 = vpow2.f32 %v1689_v37  ;;  %vm849_vm9 = vweird.f32 %v1746_v39 }
 0x243   :  { %vm850_vm11 = vmor %vm848_vm10, %vm849_vm9 }
 0x244   :  { %v845_v48 = vsub.f32 1.0, %v844_v46 }
 0x245   :  { %v823_v3 = vpop.f32.mrf.mxu3 }
 0x246   :  { %v846_v32 = vmul.f32 %v1746_v39, %v845_v48 }
 0x248   :  { %v1748_v28 = vpop.eup %1747  ;;  %v847_v14 = vadd.f32 %v1746_v39, %v846_v32 }
 0x249   :  { %v862_v45 = vadd.f32 1.0, %v1748_v28 }
 0x24a   :  { %v851_v16 = vsel %vm850_vm11, %v1746_v39, %v847_v14 }
 0x24b   :  { %v856_v21 = vsel %vm853_vm12, %v855_v15, %v851_v16  ;;  %1749 = vrcp.f32 %v862_v45  ;;  %v874_v61 = vand.u32 2147483648, %v862_v45  ;;  %v872_v56 = vand.u32 2147483647, %v862_v45 }
 0x24c   :  { %v879_v2 = vmul.f32 %v878_v31, %v856_v21  ;;  %vm868_vm14 = vweird.f32 %v862_v45 }
 0x24d   :  { %v875_v5 = vor.u32 1.1754944e-38, %v874_v61  ;;  %vm873_vm0 = vcmp.eq.f32.partialorder %v872_v56, 8.507059e+37  ;;  %v2626_v61 = vpop.f32.mrf.mxu1 }
 0x24e   :  { %v880_v3 = vadd.f32 %v879_v2, %v538_v23  ;;  %v500_v2 = vadd.f32 %v2440_v52, %v2326_v62 }
 0x250   :  { %1751 = vtanh.f32 %v880_v3 }
 0x251   :  { %v1750_v37 = vpop.eup %1749 }
 0x252   :  { %v864_v46 = vmul.f32 %v1750_v37, %v862_v45  ;;  %vm869_vm13 = vweird.f32 %v1750_v37 }
 0x253   :  { %vm870_vm15 = vmor %vm868_vm14, %vm869_vm13 }
 0x254   :  { %v865_v48 = vsub.f32 1.0, %v864_v46 }
 0x256   :  { %v866_v32 = vmul.f32 %v1750_v37, %v865_v48  ;;  %v1752_v14 = vpop.eup %1751 }
 0x258   :  { %v867_v58 = vadd.f32 %v1750_v37, %v866_v32 }
 0x25a   :  { %v871_v39 = vsel %vm870_vm15, %v1750_v37, %v867_v58 }
 0x25b   :  { %v876_v7 = vsel %vm873_vm0, %v875_v5, %v871_v39 }
 0x25c   :  { %v882_v28 = vsub.f32 1.0, %v876_v7  ;;  %v884_v15 = vmul.f32 %v876_v7, %v2543_v33  ;;  %v2628_v33 = vpop.f32.mrf.mxu2 }
 0x25e   :  { %v883_v49 = vmul.f32 %v1752_v14, %v882_v28 }
 0x260   :  { %v2598_v31 = vadd.f32 %v884_v15, %v883_v49 }
 0x262   :  { %v892_v16 = vpack.c.bf16 %v2598_v31, %v2598_v31 }
 0x264   :  { %901 = vmatmul.bf16.vlgmr.msra.gmra.mxu1 %v892_v16  ;;  %914 = vmatmul.bf16.vlgmr.msra.gmra.mxu2 %v892_v16 }
 0x265   :  { %927 = vmatmul.bf16.vlgmr.msrb.gmra.mxu3 %v892_v16  ;;  %1107 = vmatpush.bf16.msra.mxu1 %v2256_v41 }
 0x266   :  { %1175 = vmatpush.bf16.msra.mxu2 %v2206_v4  ;;  %1188 = vmatpush.bf16.msrb.mxu3 %v2346_v6 }
 0x269   :  { %1108 = vmatpush.bf16.msra.mxu1 %v2275_v47 }
 0x26a   :  { %1176 = vmatpush.bf16.msra.mxu2 %v2216_v12  ;;  %1189 = vmatpush.bf16.msrb.mxu3 %v2370_v18 }
 0x26d   :  { %1109 = vmatpush.bf16.msra.mxu1 %v2294_v53 }
 0x26e   :  { %1177 = vmatpush.bf16.msra.mxu2 %v2228_v17  ;;  %1190 = vmatpush.bf16.msrb.mxu3 %v2390_v26 }
 0x271   :  { %1110 = vmatpush.bf16.msra.mxu1 %v2318_v60 }
 0x272   :  { %1178 = vmatpush.bf16.msra.mxu2 %v2248_v38  ;;  %1191 = vmatpush.bf16.msrb.mxu3 %v2417_v36 }
 0x275   :  { %1111 = vmatpush.bf16.msra.mxu1 %v2352_v8 }
 0x276   :  { %1179 = vmatpush.bf16.msra.mxu2 %v2267_v44  ;;  %1192 = vmatpush.bf16.msrb.mxu3 %v2442_v54 }
 0x279   :  { %1112 = vmatpush.bf16.msra.mxu1 %v2375_v22 }
 0x27a   :  { %1180 = vmatpush.bf16.msra.mxu2 %v2286_v50  ;;  %1193 = vmatpush.bf16.msrb.mxu3 %v2454_v63 }
 0x27d   :  { %1113 = vmatpush.bf16.msra.mxu1 %v2397_v29 }
 0x27e   :  { %1181 = vmatpush.bf16.msra.mxu2 %v2310_v57  ;;  %1194 = vmatpush.bf16.msrb.mxu3 %v2473_v11 }
 0x281   :  { %1114 = vmatpush.bf16.msra.mxu1 %v2422_v40 }
 0x282   :  { %1182 = vmatpush.bf16.msra.mxu2 %v2335_v1  ;;  %1195 = vmatpush.bf16.msrb.mxu3 %v2495_v34 }
 0x2e1   :  { %v902_v45 = vpop.f32.mrf.mxu1 }
 0x2e2   :  { %v932_v21 = vadd.f32 %v902_v45, %v2445_v55 }
 0x2e4   :  { %v1690_v23 = vmul.f32 -1.442695, %v932_v21 }
 0x2e6   :  { %1753 = vpow2.f32 %v1690_v23 }
 0x2e7   :  { %v915_v3 = vpop.f32.mrf.mxu2 }
 0x2e8   :  { %v952_v37 = vadd.f32 %v915_v3, %v500_v2  ;;  %v928_v46 = vpop.f32.mrf.mxu3 }
 0x2e9   :  { %v904_v48 = vpop.f32.mrf.mxu1 }
 0x2ea   :  { %v1691_v32 = vmul.f32 -1.442695, %v952_v37  ;;  %v972_v48 = vadd.f32 %v2501_v35, %v928_v46 }
 0x2ec   :  { %v1754_v56 = vpop.eup %1753  ;;  %1755 = vpow2.f32 %v1691_v32 }
 0x2ed   :  { %v936_v58 = vadd.f32 1.0, %v1754_v56 }
 0x2ef   :  { %1757 = vrcp.f32 %v936_v58  ;;  %v917_v5 = vpop.f32.mrf.mxu2  ;;  %v948_v15 = vand.u32 2147483648, %v936_v58  ;;  %v946_v16 = vand.u32 2147483647, %v936_v58  ;;  %vm942_vm2 = vweird.f32 %v936_v58 }
 0x2f0   :  { %v930_v39 = vpop.f32.mrf.mxu3 }
 0x2f1   :  { %v949_v2 = vor.u32 1.1754944e-38, %v948_v15  ;;  %vm947_vm4 = vcmp.eq.f32.partialorder %v946_v16, 8.507059e+37 }
 0x2f2   :  { %v1756_v7 = vpop.eup %1755 }
 0x2f3   :  { %v956_v28 = vadd.f32 1.0, %v1756_v7 }
 0x2f5   :  { %v1758_v14 = vpop.eup %1757  ;;  %1759 = vrcp.f32 %v956_v28  ;;  %v968_v5 = vand.u32 2147483648, %v956_v28  ;;  %v966_v7 = vand.u32 2147483647, %v956_v28  ;;  %vm962_vm6 = vweird.f32 %v956_v28 }
 0x2f6   :  { %v938_v55 = vmul.f32 %v1758_v14, %v936_v58  ;;  %vm943_vm1 = vweird.f32 %v1758_v14 }
 0x2f7   :  { %vm944_vm3 = vmor %vm942_vm2, %vm943_vm1  ;;  %vm967_vm8 = vcmp.eq.f32.partialorder %v966_v7, 8.507059e+37 }
 0x2f8   :  { %v939_v49 = vsub.f32 1.0, %v938_v55 }
 0x2fa   :  { %v940_v52 = vmul.f32 %v1758_v14, %v939_v49 }
 0x2fb   :  { %v1760_v45 = vpop.eup %1759 }
 0x2fc   :  { %v958_v21 = vmul.f32 %v1760_v45, %v956_v28  ;;  %v941_v23 = vadd.f32 %v1758_v14, %v940_v52  ;;  %vm963_vm5 = vweird.f32 %v1760_v45  ;;  %v969_v52 = vor.u32 1.1754944e-38, %v968_v5 }
 0x2fd   :  { %vm964_vm7 = vmor %vm962_vm6, %vm963_vm5 }
 0x2fe   :  { %v959_v3 = vsub.f32 1.0, %v958_v21  ;;  %v945_v37 = vsel %vm944_vm3, %v1758_v14, %v941_v23 }
 0x2ff   :  { %v950_v32 = vsel %vm947_vm4, %v949_v2, %v945_v37 }
 0x300   :  { %v960_v56 = vmul.f32 %v1760_v45, %v959_v3  ;;  %v973_v39 = vmul.f32 %v972_v48, %v950_v32 }
 0x302   :  { %v974_v55 = vadd.f32 %v973_v39, %v2479_v20  ;;  %v961_v49 = vadd.f32 %v1760_v45, %v960_v56 }
 0x304   :  { %1761 = vtanh.f32 %v974_v55  ;;  %v965_v58 = vsel %vm964_vm7, %v1760_v45, %v961_v49 }
 0x305   :  { %v970_v15 = vsel %vm967_vm8, %v969_v52, %v965_v58 }
 0x306   :  { %v976_v14 = vsub.f32 1.0, %v970_v15  ;;  %v978_v46 = vmul.f32 %v970_v15, %v2598_v31 }
 0x30a   :  { %v1762_v16 = vpop.eup %1761 }
 0x30b   :  { %v977_v21 = vmul.f32 %v1762_v16, %v976_v14 }
 0x30d   :  { %v2636_v23 = vadd.f32 %v978_v46, %v977_v21 }
 0x30f   :  { %v986_v2 = vpack.c.bf16 %v2636_v23, %v2636_v23 }
 0x311   :  { %995 = vmatmul.bf16.vlgmr.msrb.gmra.mxu0 %v986_v2  ;;  %1008 = vmatmul.bf16.vlgmr.msrb.gmra.mxu1 %v986_v2 }
 0x312   :  { %1021 = vmatmul.bf16.vlgmr.msrb.gmra.mxu2 %v986_v2  ;;  %1201 = vmatpush.bf16.msrb.mxu0 %v2256_v41 }
 0x313   :  { %1269 = vmatpush.bf16.msrb.mxu1 %v2206_v4  ;;  %1282 = vmatpush.bf16.msrb.mxu2 %v2346_v6 }
 0x316   :  { %1202 = vmatpush.bf16.msrb.mxu0 %v2275_v47 }
 0x317   :  { %1270 = vmatpush.bf16.msrb.mxu1 %v2216_v12  ;;  %1283 = vmatpush.bf16.msrb.mxu2 %v2370_v18 }
 0x31a   :  { %1203 = vmatpush.bf16.msrb.mxu0 %v2294_v53 }
 0x31b   :  { %1271 = vmatpush.bf16.msrb.mxu1 %v2228_v17  ;;  %1284 = vmatpush.bf16.msrb.mxu2 %v2390_v26 }
 0x31e   :  { %1204 = vmatpush.bf16.msrb.mxu0 %v2318_v60 }
 0x31f   :  { %1272 = vmatpush.bf16.msrb.mxu1 %v2248_v38  ;;  %1285 = vmatpush.bf16.msrb.mxu2 %v2417_v36 }
 0x322   :  { %1205 = vmatpush.bf16.msrb.mxu0 %v2352_v8 }
 0x323   :  { %1273 = vmatpush.bf16.msrb.mxu1 %v2267_v44  ;;  %1286 = vmatpush.bf16.msrb.mxu2 %v2442_v54 }
 0x326   :  { %1206 = vmatpush.bf16.msrb.mxu0 %v2375_v22 }
 0x327   :  { %1274 = vmatpush.bf16.msrb.mxu1 %v2286_v50  ;;  %1287 = vmatpush.bf16.msrb.mxu2 %v2454_v63 }
 0x32a   :  { %1207 = vmatpush.bf16.msrb.mxu0 %v2397_v29 }
 0x32b   :  { %1275 = vmatpush.bf16.msrb.mxu1 %v2310_v57  ;;  %1288 = vmatpush.bf16.msrb.mxu2 %v2473_v11 }
 0x32e   :  { %1208 = vmatpush.bf16.msrb.mxu0 %v2422_v40 }
 0x32f   :  { %1276 = vmatpush.bf16.msrb.mxu1 %v2335_v1  ;;  %1289 = vmatpush.bf16.msrb.mxu2 %v2495_v34 }
 0x38e   :  { %v996_v20 = vpop.f32.mrf.mxu0  ;;  %v1009_v31 = vpop.f32.mrf.mxu1 }
 0x38f   :  { %v1026_v28 = vadd.f32 %v996_v20, %v2488_v27  ;;  %v1046_v45 = vadd.f32 %v1009_v31, %v2491_v30 }
 0x391   :  { %v1692_v3 = vmul.f32 -1.442695, %v1026_v28  ;;  %v1693_v37 = vmul.f32 -1.442695, %v1046_v45 }
 0x393   :  { %1763 = vpow2.f32 %v1692_v3 }
 0x394   :  { %1765 = vpow2.f32 %v1693_v37 }
 0x395   :  { %v1022_v48 = vpop.f32.mrf.mxu2 }
 0x396   :  { %v998_v32 = vpop.f32.mrf.mxu0  ;;  %v1011_v56 = vpop.f32.mrf.mxu1  ;;  %v1066_v45 = vadd.f32 %v2501_v35, %v1022_v48 }
 0x399   :  { %v1764_v5 = vpop.eup %1763 }
 0x39a   :  { %v1766_v39 = vpop.eup %1765  ;;  %v1030_v7 = vadd.f32 1.0, %v1764_v5 }
 0x39b   :  { %v1050_v55 = vadd.f32 1.0, %v1766_v39 }
 0x39c   :  { %1767 = vrcp.f32 %v1030_v7  ;;  %v1042_v16 = vand.u32 2147483648, %v1030_v7  ;;  %v1040_v46 = vand.u32 2147483647, %v1030_v7  ;;  %vm1036_vm10 = vweird.f32 %v1030_v7 }
 0x39d   :  { %1769 = vrcp.f32 %v1050_v55  ;;  %v1024_v49 = vpop.f32.mrf.mxu2  ;;  %v1062_v32 = vand.u32 2147483648, %v1050_v55  ;;  %vm1056_vm14 = vweird.f32 %v1050_v55  ;;  %v1060_v5 = vand.u32 2147483647, %v1050_v55 }
 0x39e   :  { %v1043_v31 = vor.u32 1.1754944e-38, %v1042_v16  ;;  %vm1041_vm12 = vcmp.eq.f32.partialorder %v1040_v46, 8.507059e+37 }
 0x39f   :  { %vm1061_vm0 = vcmp.eq.f32.partialorder %v1060_v5, 8.507059e+37 }
 0x3a2   :  { %v1768_v52 = vpop.eup %1767 }
 0x3a3   :  { %v1770_v58 = vpop.eup %1769  ;;  %v1032_v15 = vmul.f32 %v1768_v52, %v1030_v7  ;;  %vm1037_vm9 = vweird.f32 %v1768_v52 }
 0x3a4   :  { %v1052_v27 = vmul.f32 %v1770_v58, %v1050_v55  ;;  %vm1038_vm11 = vmor %vm1036_vm10, %vm1037_vm9  ;;  %vm1057_vm13 = vweird.f32 %v1770_v58 }
 0x3a5   :  { %v1033_v14 = vsub.f32 1.0, %v1032_v15  ;;  %vm1058_vm15 = vmor %vm1056_vm14, %vm1057_vm13  ;;  %v1063_v15 = vor.u32 1.1754944e-38, %v1062_v32 }
 0x3a6   :  { %v1053_v30 = vsub.f32 1.0, %v1052_v27 }
 0x3a7   :  { %v1034_v21 = vmul.f32 %v1768_v52, %v1033_v14 }
 0x3a8   :  { %v1054_v2 = vmul.f32 %v1770_v58, %v1053_v30 }
 0x3a9   :  { %v1035_v20 = vadd.f32 %v1768_v52, %v1034_v21 }
 0x3aa   :  { %v1055_v37 = vadd.f32 %v1770_v58, %v1054_v2 }
 0x3ab   :  { %v1039_v28 = vsel %vm1038_vm11, %v1768_v52, %v1035_v20 }
 0x3ac   :  { %v1044_v3 = vsel %vm1041_vm12, %v1043_v31, %v1039_v28  ;;  %v1059_v49 = vsel %vm1058_vm15, %v1770_v58, %v1055_v37 }
 0x3ad   :  { %v1067_v56 = vmul.f32 %v1066_v45, %v1044_v3  ;;  %v1064_v7 = vsel %vm1061_vm0, %v1063_v15, %v1059_v49 }
 0x3ae   :  { %v1070_v27 = vsub.f32 1.0, %v1064_v7  ;;  %v1072_v48 = vmul.f32 %v1064_v7, %v2636_v23 }
 0x3af   :  { %v1068_v39 = vadd.f32 %v1067_v56, %v2516_v0 }
 0x3b1   :  { %1771 = vtanh.f32 %v1068_v39 }
 0x3b7   :  { %v1772_v52 = vpop.eup %1771 }
 0x3b8   :  { %v1071_v14 = vmul.f32 %v1772_v52, %v1070_v27 }
 0x3ba   :  { %v2669_v30 = vadd.f32 %v1072_v48, %v1071_v14 }
 0x3bc   :  { %v1080_v16 = vpack.c.bf16 %v2669_v30, %v2669_v30 }
 0x3be   :  { %1089 = vmatmul.bf16.vlgmr.msra.gmra.mxu3 %v1080_v16  ;;  %1102 = vmatmul.bf16.vlgmr.msra.gmra.mxu0 %v1080_v16 }
 0x3bf   :  { %1115 = vmatmul.bf16.vlgmr.msra.gmra.mxu1 %v1080_v16  ;;  %1295 = vmatpush.bf16.msra.mxu3 %v2256_v41 }
 0x3c0   :  { %1363 = vmatpush.bf16.msra.mxu0 %v2206_v4  ;;  %1376 = vmatpush.bf16.msra.mxu1 %v2346_v6 }
 0x3c3   :  { %1296 = vmatpush.bf16.msra.mxu3 %v2275_v47 }
 0x3c4   :  { %1364 = vmatpush.bf16.msra.mxu0 %v2216_v12  ;;  %1377 = vmatpush.bf16.msra.mxu1 %v2370_v18 }
 0x3c7   :  { %1297 = vmatpush.bf16.msra.mxu3 %v2294_v53 }
 0x3c8   :  { %1365 = vmatpush.bf16.msra.mxu0 %v2228_v17  ;;  %1378 = vmatpush.bf16.msra.mxu1 %v2390_v26 }
 0x3cb   :  { %1298 = vmatpush.bf16.msra.mxu3 %v2318_v60 }
 0x3cc   :  { %1366 = vmatpush.bf16.msra.mxu0 %v2248_v38  ;;  %1379 = vmatpush.bf16.msra.mxu1 %v2417_v36 }
 0x3cf   :  { %1299 = vmatpush.bf16.msra.mxu3 %v2352_v8 }
 0x3d0   :  { %1367 = vmatpush.bf16.msra.mxu0 %v2267_v44  ;;  %1380 = vmatpush.bf16.msra.mxu1 %v2442_v54 }
 0x3d3   :  { %1300 = vmatpush.bf16.msra.mxu3 %v2375_v22 }
 0x3d4   :  { %1368 = vmatpush.bf16.msra.mxu0 %v2286_v50  ;;  %1381 = vmatpush.bf16.msra.mxu1 %v2454_v63 }
 0x3d7   :  { %1301 = vmatpush.bf16.msra.mxu3 %v2397_v29 }
 0x3d8   :  { %1369 = vmatpush.bf16.msra.mxu0 %v2310_v57  ;;  %1382 = vmatpush.bf16.msra.mxu1 %v2473_v11 }
 0x3db   :  { %1302 = vmatpush.bf16.msra.mxu3 %v2422_v40 }
 0x3dc   :  { %1370 = vmatpush.bf16.msra.mxu0 %v2335_v1  ;;  %1383 = vmatpush.bf16.msra.mxu1 %v2495_v34 }
 0x43b   :  { %v1103_v4 = vpop.f32.mrf.mxu0 }
 0x43c   :  { %v1140_v12 = vadd.f32 %v1103_v4, %v2525_v13  ;;  %v1116_v17 = vpop.f32.mrf.mxu1 }
 0x43d   :  { %v1160_v31 = vadd.f32 %v2501_v35, %v1116_v17 }
 0x43e   :  { %v1695_v38 = vmul.f32 -1.442695, %v1140_v12 }
 0x440   :  { %1773 = vpow2.f32 %v1695_v38 }
 0x441   :  { %v1090_v44 = vpop.f32.mrf.mxu3 }
 0x442   :  { %v1120_v50 = vadd.f32 %v1090_v44, %v2522_v9 }
 0x443   :  { %v1105_v6 = vpop.f32.mrf.mxu0 }
 0x444   :  { %v1694_v18 = vmul.f32 -1.442695, %v1120_v50  ;;  %v1118_v57 = vpop.f32.mrf.mxu1 }
 0x446   :  { %v1774_v26 = vpop.eup %1773  ;;  %1775 = vpow2.f32 %v1694_v18 }
 0x447   :  { %v1144_v36 = vadd.f32 1.0, %v1774_v26 }
 0x449   :  { %v1092_v54 = vpop.f32.mrf.mxu3  ;;  %1777 = vrcp.f32 %v1144_v36  ;;  %v1156_v37 = vand.u32 2147483648, %v1144_v36  ;;  %vm1150_vm6 = vweird.f32 %v1144_v36  ;;  %v1154_v56 = vand.u32 2147483647, %v1144_v36 }
 0x44b   :  { %v1157_v49 = vor.u32 1.1754944e-38, %v1156_v37  ;;  %vm1155_vm8 = vcmp.eq.f32.partialorder %v1154_v56, 8.507059e+37 }
 0x44c   :  { %v1776_v1 = vpop.eup %1775 }
 0x44d   :  { %v1124_v63 = vadd.f32 1.0, %v1776_v1 }
 0x44f   :  { %1779 = vrcp.f32 %v1124_v63  ;;  %v1778_v11 = vpop.eup %1777  ;;  %v1136_v58 = vand.u32 2147483648, %v1124_v63  ;;  %v1134_v9 = vand.u32 2147483647, %v1124_v63  ;;  %vm1130_vm2 = vweird.f32 %v1124_v63 }
 0x450   :  { %v1146_v34 = vmul.f32 %v1778_v11, %v1144_v36  ;;  %vm1151_vm5 = vweird.f32 %v1778_v11 }
 0x451   :  { %v1137_v20 = vor.u32 1.1754944e-38, %v1136_v58  ;;  %vm1135_vm4 = vcmp.eq.f32.partialorder %v1134_v9, 8.507059e+37  ;;  %vm1152_vm7 = vmor %vm1150_vm6, %vm1151_vm5 }
 0x452   :  { %v1147_v23 = vsub.f32 1.0, %v1146_v34 }
 0x454   :  { %v1148_v46 = vmul.f32 %v1778_v11, %v1147_v23 }
 0x455   :  { %v1780_v0 = vpop.eup %1779 }
 0x456   :  { %v1126_v13 = vmul.f32 %v1780_v0, %v1124_v63  ;;  %vm1131_vm1 = vweird.f32 %v1780_v0  ;;  %v1149_v3 = vadd.f32 %v1778_v11, %v1148_v46 }
 0x457   :  { %vm1132_vm3 = vmor %vm1130_vm2, %vm1131_vm1 }
 0x458   :  { %v1127_v55 = vsub.f32 1.0, %v1126_v13  ;;  %v1153_v39 = vsel %vm1152_vm7, %v1778_v11, %v1149_v3 }
 0x459   :  { %v1158_v15 = vsel %vm1155_vm8, %v1157_v49, %v1153_v39 }
 0x45a   :  { %v1128_v21 = vmul.f32 %v1780_v0, %v1127_v55  ;;  %v1164_v7 = vsub.f32 1.0, %v1158_v15  ;;  %v1166_v14 = vmul.f32 %v1158_v15, %v2669_v30 }
 0x45c   :  { %v1129_v2 = vadd.f32 %v1780_v0, %v1128_v21 }
 0x45e   :  { %v1133_v28 = vsel %vm1132_vm3, %v1780_v0, %v1129_v2 }
 0x45f   :  { %v1138_v45 = vsel %vm1135_vm4, %v1137_v20, %v1133_v28 }
 0x460   :  { %v1161_v32 = vmul.f32 %v1160_v31, %v1138_v45 }
 0x462   :  { %v1162_v5 = vadd.f32 %v1161_v32, %v2535_v19 }
 0x464   :  { %1781 = vtanh.f32 %v1162_v5 }
 0x46a   :  { %v1782_v27 = vpop.eup %1781 }
 0x46b   :  { %v1165_v52 = vmul.f32 %v1782_v27, %v1164_v7 }
 0x46d   :  { %v2702_v48 = vadd.f32 %v1166_v14, %v1165_v52 }
 0x46f   :  { %v1174_v16 = vpack.c.bf16 %v2702_v48, %v2702_v48 }
 0x471   :  { %1183 = vmatmul.bf16.vlgmr.msra.gmra.mxu2 %v1174_v16  ;;  %1196 = vmatmul.bf16.vlgmr.msrb.gmra.mxu3 %v1174_v16 }
 0x472   :  { %1209 = vmatmul.bf16.vlgmr.msrb.gmra.mxu0 %v1174_v16  ;;  %1389 = vmatpush.bf16.msra.mxu2 %v2256_v41 }
 0x476   :  { %1390 = vmatpush.bf16.msra.mxu2 %v2275_v47 }
 0x47a   :  { %1391 = vmatpush.bf16.msra.mxu2 %v2294_v53 }
 0x47e   :  { %1392 = vmatpush.bf16.msra.mxu2 %v2318_v60 }
 0x482   :  { %1393 = vmatpush.bf16.msra.mxu2 %v2352_v8 }
 0x486   :  { %1394 = vmatpush.bf16.msra.mxu2 %v2375_v22 }
 0x48a   :  { %1395 = vmatpush.bf16.msra.mxu2 %v2397_v29 }
 0x48e   :  { %1396 = vmatpush.bf16.msra.mxu2 %v2422_v40 }
 0x4ef   :  { %v1210_v19 = vpop.f32.mrf.mxu0 }
 0x4f0   :  { %v1254_v11 = vadd.f32 %v2501_v35, %v1210_v19 }
 0x4f4   :  { %v1184_v30 = vpop.f32.mrf.mxu2  ;;  %v1197_v4 = vpop.f32.mrf.mxu3 }
 0x4f5   :  { %v1214_v12 = vadd.f32 %v1184_v30, %v2538_v24  ;;  %v1234_v41 = vadd.f32 %v1197_v4, %v2541_v25 }
 0x4f7   :  { %v1696_v47 = vmul.f32 -1.442695, %v1214_v12  ;;  %v1697_v17 = vmul.f32 -1.442695, %v1234_v41  ;;  %v1212_v53 = vpop.f32.mrf.mxu0 }
 0x4f9   :  { %1783 = vpow2.f32 %v1696_v47 }
 0x4fa   :  { %1785 = vpow2.f32 %v1697_v17 }
 0x4fc   :  { %v1186_v60 = vpop.f32.mrf.mxu2  ;;  %v1199_v8 = vpop.f32.mrf.mxu3 }
 0x4ff   :  { %v1784_v38 = vpop.eup %1783 }
 0x500   :  { %v1786_v22 = vpop.eup %1785  ;;  %v1218_v44 = vadd.f32 1.0, %v1784_v38 }
 0x501   :  { %v1238_v29 = vadd.f32 1.0, %v1786_v22 }
 0x502   :  { %1787 = vrcp.f32 %v1218_v44  ;;  %v1230_v57 = vand.u32 2147483648, %v1218_v44  ;;  %v1228_v36 = vand.u32 2147483647, %v1218_v44  ;;  %vm1224_vm10 = vweird.f32 %v1218_v44 }
 0x503   :  { %1789 = vrcp.f32 %v1238_v29  ;;  %v1250_v55 = vand.u32 2147483648, %v1238_v29  ;;  %vm1244_vm14 = vweird.f32 %v1238_v29  ;;  %v1248_v58 = vand.u32 2147483647, %v1238_v29 }
 0x504   :  { %v1231_v63 = vor.u32 1.1754944e-38, %v1230_v57  ;;  %vm1229_vm12 = vcmp.eq.f32.partialorder %v1228_v36, 8.507059e+37 }
 0x505   :  { %v1251_v46 = vor.u32 1.1754944e-38, %v1250_v55  ;;  %vm1249_vm0 = vcmp.eq.f32.partialorder %v1248_v58, 8.507059e+37  ;;  %v1460_v55 = vld [vmem:[%s2798_s6 + $0x50] sm:$0xff]  ;;  %v1459_v58 = vld [vmem:[%s2798_s6 + $0x48] sm:$0xff] }
 0x508   :  { %v1788_v40 = vpop.eup %1787 }
 0x509   :  { %v1790_v50 = vpop.eup %1789  ;;  %v1220_v6 = vmul.f32 %v1788_v40, %v1218_v44  ;;  %vm1225_vm9 = vweird.f32 %v1788_v40 }
 0x50a   :  { %v1240_v18 = vmul.f32 %v1790_v50, %v1238_v29  ;;  %vm1226_vm11 = vmor %vm1224_vm10, %vm1225_vm9  ;;  %vm1245_vm13 = vweird.f32 %v1790_v50 }
 0x50b   :  { %v1221_v24 = vsub.f32 1.0, %v1220_v6  ;;  %vm1246_vm15 = vmor %vm1244_vm14, %vm1245_vm13 }
 0x50c   :  { %v1241_v25 = vsub.f32 1.0, %v1240_v18 }
 0x50d   :  { %v1222_v26 = vmul.f32 %v1788_v40, %v1221_v24 }
 0x50e   :  { %v1242_v54 = vmul.f32 %v1790_v50, %v1241_v25 }
 0x50f   :  { %v1223_v1 = vadd.f32 %v1788_v40, %v1222_v26 }
 0x510   :  { %v1243_v13 = vadd.f32 %v1790_v50, %v1242_v54 }
 0x511   :  { %v1227_v34 = vsel %vm1226_vm11, %v1788_v40, %v1223_v1 }
 0x512   :  { %v1232_v0 = vsel %vm1229_vm12, %v1231_v63, %v1227_v34  ;;  %v1247_v9 = vsel %vm1246_vm15, %v1790_v50, %v1243_v13  ;;  %v1464_v34 = vld [vmem:[%s2798_s6 + $0x70] sm:$0xff]  ;;  %v1462_v13 = vld [vmem:[%s2798_s6 + $0x60] sm:$0xff] }
 0x513   :  { %v1255_v23 = vmul.f32 %v1254_v11, %v1232_v0  ;;  %v1252_v2 = vsel %vm1249_vm0, %v1251_v46, %v1247_v9  ;;  %v1463_v0 = vld [vmem:[%s2798_s6 + $0x68] sm:$0xff]  ;;  %v2803_v9 = vld [vmem:[#allocation3_spill] sm:$0xff] }
 0x514   :  { %v1258_v20 = vsub.f32 1.0, %v1252_v2  ;;  %v1260_v45 = vmul.f32 %v1252_v2, %v2702_v48  ;;  %v2804_v46 = vld [vmem:[#allocation4_spill] sm:$0xff] }
 0x515   :  { %v1256_v21 = vadd.f32 %v1255_v23, %v2552_v42  ;;  %v1461_v23 = vld [vmem:[%s2798_s6 + $0x58] sm:$0xff]  ;;  %v474_v2 = vadd.f32 %v2804_v46, %v2803_v9 }
 0x517   :  { %1791 = vtanh.f32 %v1256_v21  ;;  %v1458_v21 = vld [vmem:[%s2798_s6 + $0x40] sm:$0xff] }
 0x51d   :  { %v1792_v31 = vpop.eup %1791 }
 0x51e   :  { %v1259_v28 = vmul.f32 %v1792_v31, %v1258_v20  ;;  %v515_v20 = vadd.f32 %v2626_v61, %v2326_v62  ;;  %v1457_v31 = vld [vmem:[%s2798_s6 + $0x38] sm:$0xff]  ;;  %v1455_v62 = vld [vmem:[%s2798_s6 + $0x28] sm:$0xff]  ;;  %v1454_v61 = vld [vmem:[%s2798_s6 + $0x20] sm:$0xff] }
 0x520   :  { %v1261_v3 = vadd.f32 %v1260_v45, %v1259_v28 }
 0x522   :  { %v1268_v37 = vpack.c.bf16 %v1261_v3, %v1261_v3 }
 0x524   :  { %1277 = vmatmul.bf16.vlgmr.msrb.gmra.mxu1 %v1268_v37  ;;  %1290 = vmatmul.bf16.vlgmr.msrb.gmra.mxu2 %v1268_v37 }
 0x525   :  { %1303 = vmatmul.bf16.vlgmr.msra.gmra.mxu3 %v1268_v37 }
 0x5a1   :  { %v1278_v32 = vpop.f32.mrf.mxu1 }
 0x5a2   :  { %v1308_v56 = vadd.f32 %v1278_v32, %v2556_v43  ;;  %v1456_v32 = vld [vmem:[%s2798_s6 + $0x30] sm:$0xff] }
 0x5a4   :  { %v1698_v5 = vmul.f32 -1.442695, %v1308_v56 }
 0x5a6   :  { %1793 = vpow2.f32 %v1698_v5 }
 0x5a7   :  { %v1291_v42 = vpop.f32.mrf.mxu2 }
 0x5a8   :  { %v1328_v39 = vadd.f32 %v1291_v42, %v2559_v51  ;;  %v1304_v49 = vpop.f32.mrf.mxu3  ;;  %v1453_v42 = vld [vmem:[%s2798_s6 + $0x18] sm:$0xff] }
 0x5a9   :  { %v1280_v15 = vpop.f32.mrf.mxu1  ;;  %v1348_v22 = vadd.f32 %v2501_v35, %v1304_v49  ;;  %v1452_v49 = vld [vmem:[%s2798_s6 + $0x10] sm:$0xff] }
 0x5aa   :  { %v1699_v7 = vmul.f32 -1.442695, %v1328_v39 }
 0x5ac   :  { %v1794_v27 = vpop.eup %1793  ;;  %1795 = vpow2.f32 %v1699_v7 }
 0x5ad   :  { %v1312_v52 = vadd.f32 1.0, %v1794_v27  ;;  %v1451_v27 = vld [vmem:[%s2798_s6 + $0x8] sm:$0xff] }
 0x5af   :  { %1797 = vrcp.f32 %v1312_v52  ;;  %v1293_v14 = vpop.f32.mrf.mxu2  ;;  %v1324_v12 = vand.u32 2147483648, %v1312_v52  ;;  %v1322_v47 = vand.u32 2147483647, %v1312_v52  ;;  %vm1318_vm2 = vweird.f32 %v1312_v52 }
 0x5b0   :  { %v1306_v48 = vpop.f32.mrf.mxu3  ;;  %v1450_v14 = vld [vmem:[%s2798_s6] sm:$0xff] }
 0x5b1   :  { %v1325_v60 = vor.u32 1.1754944e-38, %v1324_v12  ;;  %vm1323_vm4 = vcmp.eq.f32.partialorder %v1322_v47, 8.507059e+37 }
 0x5b2   :  { %v1796_v16 = vpop.eup %1795 }
 0x5b3   :  { %v1332_v19 = vadd.f32 1.0, %v1796_v16 }
 0x5b5   :  { %v1798_v30 = vpop.eup %1797  ;;  %1799 = vrcp.f32 %v1332_v19  ;;  %v1344_v40 = vand.u32 2147483648, %v1332_v19  ;;  %v1342_v6 = vand.u32 2147483647, %v1332_v19  ;;  %vm1338_vm6 = vweird.f32 %v1332_v19 }
 0x5b6   :  { %v1314_v4 = vmul.f32 %v1798_v30, %v1312_v52  ;;  %vm1319_vm1 = vweird.f32 %v1798_v30 }
 0x5b7   :  { %vm1320_vm3 = vmor %vm1318_vm2, %vm1319_vm1  ;;  %v1345_v57 = vor.u32 1.1754944e-38, %v1344_v40  ;;  %vm1343_vm8 = vcmp.eq.f32.partialorder %v1342_v6, 8.507059e+37 }
 0x5b8   :  { %v1315_v43 = vsub.f32 1.0, %v1314_v4 }
 0x5ba   :  { %v1316_v41 = vmul.f32 %v1798_v30, %v1315_v43 }
 0x5bb   :  { %v1800_v51 = vpop.eup %1799 }
 0x5bc   :  { %v1334_v17 = vmul.f32 %v1800_v51, %v1332_v19  ;;  %v1317_v53 = vadd.f32 %v1798_v30, %v1316_v41  ;;  %vm1339_vm5 = vweird.f32 %v1800_v51 }
 0x5bd   :  { %vm1340_vm7 = vmor %vm1338_vm6, %vm1339_vm5 }
 0x5be   :  { %v1335_v8 = vsub.f32 1.0, %v1334_v17  ;;  %v1321_v38 = vsel %vm1320_vm3, %v1798_v30, %v1317_v53 }
 0x5bf   :  { %v1326_v44 = vsel %vm1323_vm4, %v1325_v60, %v1321_v38 }
 0x5c0   :  { %v1336_v29 = vmul.f32 %v1800_v51, %v1335_v8  ;;  %v1349_v50 = vmul.f32 %v1348_v22, %v1326_v44 }
 0x5c2   :  { %v1337_v18 = vadd.f32 %v1800_v51, %v1336_v29  ;;  %v1350_v24 = vadd.f32 %v1349_v50, %v2567_v59  ;;  %v1465_v59 = vld [vmem:[%s2798_s6 + $0x78] sm:$0xff]  ;;  %v1813_v29 = vld [vmem:[%s2794_s5] ss:$0 sm:$0xff] }
 0x5c3   :  { %1470 = vmatpush.msrb.mxu3 %v1465_v59 }
 0x5c4   :  { %v1341_v25 = vsel %vm1340_vm7, %v1800_v51, %v1337_v18  ;;  %1801 = vtanh.f32 %v1350_v24  ;;  %v556_v18 = vadd.f32 %v2628_v33, %v2470_v10  ;;  %v1732_v10 = vld [vmem:[%s2797_s7] ss:$0 sm:$0xff] }
 0x5c5   :  { %v1346_v26 = vsel %vm1343_vm8, %v1345_v57, %v1341_v25  ;;  %1471 = vmatpush.msrb.mxu3 %v1464_v34 }
 0x5c6   :  { %v1352_v36 = vsub.f32 1.0, %v1346_v26  ;;  %v1354_v35 = vmul.f32 %v1346_v26, %v1261_v3 }
 0x5c7   :  { %1472 = vmatpush.msrb.mxu3 %v1463_v0 }
 0x5c9   :  { %1473 = vmatpush.msrb.mxu3 %v1462_v13 }
 0x5ca   :  { %v1802_v54 = vpop.eup %1801 }
 0x5cb   :  { %v1353_v1 = vmul.f32 %v1802_v54, %v1352_v36  ;;  %1474 = vmatpush.msrb.mxu3 %v1461_v23 }
 0x5cd   :  { %v2723_v63 = vadd.f32 %v1354_v35, %v1353_v1  ;;  %1475 = vmatpush.msrb.mxu3 %v1460_v55 }
 0x5cf   :  { %v1362_v11 = vpack.c.bf16 %v2723_v63, %v2723_v63  ;;  %1476 = vmatpush.msrb.mxu3 %v1459_v58 }
 0x5d1   :  { %1371 = vmatmul.bf16.vlgmr.msra.gmra.mxu0 %v1362_v11  ;;  %1384 = vmatmul.bf16.vlgmr.msra.gmra.mxu1 %v1362_v11 }
 0x5d2   :  { %1397 = vmatmul.bf16.vlgmr.msra.gmra.mxu2 %v1362_v11  ;;  %1477 = vmatpush.msrb.mxu3 %v1458_v21 }
 0x5d4   :  { %1478 = vmatpush.msrb.mxu3 %v1457_v31 }
 0x5d6   :  { %1479 = vmatpush.msrb.mxu3 %v1456_v32 }
 0x5d8   :  { %1480 = vmatpush.msrb.mxu3 %v1455_v62 }
 0x5da   :  { %1481 = vmatpush.msrb.mxu3 %v1454_v61 }
 0x5dc   :  { %1482 = vmatpush.msrb.mxu3 %v1453_v42 }
 0x5de   :  { %1483 = vmatpush.msrb.mxu3 %v1452_v49 }
 0x5e0   :  { %1484 = vmatpush.msrb.mxu3 %v1451_v27 }
 0x5e2   :  { %1485 = vmatpush.msrb.mxu3 %v1450_v14 }
 0x64e   :  { %v1372_v28 = vpop.f32.mrf.mxu0  ;;  %v1385_v45 = vpop.f32.mrf.mxu1 }
 0x64f   :  { %v1402_v3 = vadd.f32 %v1372_v28, %v474_v2  ;;  %v1422_v37 = vadd.f32 %v1385_v45, %v515_v20 }
 0x651   :  { %v1700_v56 = vmul.f32 -1.442695, %v1402_v3  ;;  %v1701_v5 = vmul.f32 -1.442695, %v1422_v37 }
 0x653   :  { %1803 = vpow2.f32 %v1700_v56 }
 0x654   :  { %1805 = vpow2.f32 %v1701_v5 }
 0x655   :  { %v1398_v39 = vpop.f32.mrf.mxu2 }
 0x656   :  { %v1374_v15 = vpop.f32.mrf.mxu0  ;;  %v1387_v7 = vpop.f32.mrf.mxu1  ;;  %v1442_v40 = vadd.f32 %v1813_v29, %v1398_v39 }
 0x659   :  { %v1804_v52 = vpop.eup %1803 }
 0x65a   :  { %v1806_v48 = vpop.eup %1805  ;;  %v1406_v16 = vadd.f32 1.0, %v1804_v52 }
 0x65b   :  { %v1426_v19 = vadd.f32 1.0, %v1806_v48 }
 0x65c   :  { %1807 = vrcp.f32 %v1406_v16  ;;  %v1418_v17 = vand.u32 2147483648, %v1406_v16  ;;  %v1416_v60 = vand.u32 2147483647, %v1406_v16  ;;  %vm1412_vm10 = vweird.f32 %v1406_v16 }
 0x65d   :  { %1809 = vrcp.f32 %v1426_v19  ;;  %v1400_v30 = vpop.f32.mrf.mxu2  ;;  %v1438_v57 = vand.u32 2147483648, %v1426_v19  ;;  %vm1432_vm14 = vweird.f32 %v1426_v19  ;;  %v1436_v25 = vand.u32 2147483647, %v1426_v19 }
 0x65e   :  { %v1419_v22 = vor.u32 1.1754944e-38, %v1418_v17  ;;  %vm1417_vm12 = vcmp.eq.f32.partialorder %v1416_v60, 8.507059e+37 }
 0x65f   :  { %v1439_v54 = vor.u32 1.1754944e-38, %v1438_v57  ;;  %vm1437_vm0 = vcmp.eq.f32.partialorder %v1436_v25, 8.507059e+37 }
 0x662   :  { %v1808_v4 = vpop.eup %1807 }
 0x663   :  { %v1810_v43 = vpop.eup %1809  ;;  %v1408_v12 = vmul.f32 %v1808_v4, %v1406_v16  ;;  %vm1413_vm9 = vweird.f32 %v1808_v4 }
 0x664   :  { %v1428_v41 = vmul.f32 %v1810_v43, %v1426_v19  ;;  %vm1414_vm11 = vmor %vm1412_vm10, %vm1413_vm9  ;;  %vm1433_vm13 = vweird.f32 %v1810_v43 }
 0x665   :  { %v1409_v47 = vsub.f32 1.0, %v1408_v12  ;;  %vm1434_vm15 = vmor %vm1432_vm14, %vm1433_vm13 }
 0x666   :  { %v1429_v51 = vsub.f32 1.0, %v1428_v41 }
 0x667   :  { %v1410_v53 = vmul.f32 %v1808_v4, %v1409_v47 }
 0x668   :  { %v1430_v8 = vmul.f32 %v1810_v43, %v1429_v51 }
 0x669   :  { %v1411_v38 = vadd.f32 %v1808_v4, %v1410_v53 }
 0x66a   :  { %v1431_v6 = vadd.f32 %v1810_v43, %v1430_v8 }
 0x66b   :  { %v1415_v44 = vsel %vm1414_vm11, %v1808_v4, %v1411_v38 }
 0x66c   :  { %v1420_v50 = vsel %vm1417_vm12, %v1419_v22, %v1415_v44  ;;  %v1435_v36 = vsel %vm1434_vm15, %v1810_v43, %v1431_v6 }
 0x66d   :  { %v1443_v24 = vmul.f32 %v1442_v40, %v1420_v50  ;;  %v1440_v1 = vsel %vm1437_vm0, %v1439_v54, %v1435_v36 }
 0x66e   :  { %v1446_v35 = vsub.f32 1.0, %v1440_v1  ;;  %v1448_v34 = vmul.f32 %v1440_v1, %v2723_v63 }
 0x66f   :  { %v1444_v26 = vadd.f32 %v1443_v24, %v556_v18 }
 0x671   :  { %1811 = vtanh.f32 %v1444_v26 }
 0x677   :  { %v1812_v11 = vpop.eup %1811 }
 0x678   :  { %v1447_v59 = vmul.f32 %v1812_v11, %v1446_v35 }
 0x67a   :  { %v1449_v0 = vadd.f32 %v1448_v34, %v1447_v59 }
 0x67c   :  { %1486 = vmatmul.f32.vlgmr.msrb.gmra.mxu3 %v1449_v0 }
 0x6ff   :  { %v1487_v33 = vpop.f32.mrf.mxu3 }
 0x700   :  { %v1488_v13 = vadd.f32 %v1732_v10, %v1487_v33 }
 0x702   :  { %1490 = vst [vmem:[%s2799_s8] sm:$0xff] %v1488_v13 }

</bundles_post_ra>
